<compile_context>
chip_gen: v6e
topology: v6e:2x2x1
jax: 0.10.0
libtpu: 0.0.40
codegen_flags: <defaults>
</compile_context>

<pallas_src>
import functools

import jax
import jax.numpy as jnp
from jax import lax
from jax.experimental import pallas as pl
from jax.experimental.pallas import tpu as pltpu


LN_EPS = 1e-5      # PyTorch nn.LayerNorm default
_NEG_BIG = -1e30   # mask value for padded slot rows (exp underflows to 0)

# Rows of the packed (6, E) LayerNorm parameter array.
_LN_IN_G, _LN_IN_B, _LN_S_G, _LN_S_B, _LN_M_G, _LN_M_B = range(6)
# Rows of the packed (10, E) bias array.
_BQ, _BK, _BV, _B_IR, _B_IZ, _B_IN, _B_HR, _B_HZ, _B_HN, _B2 = range(10)


def slot_attention_kernel(
        x_ref, slots0_ref,
        ln_ref, be_ref, b1_ref,
        wq_ref, wkv_ref, wih_ref, whh_ref, w1_ref, w2_ref,
        slots_out_ref, attn_out_ref,
        k_scr, v_scr,
        *, iters, eps, num_slots, matmul_dtype, approx_recip, fuse):
    f32 = jnp.float32
    Bt, Kp, N = attn_out_ref.shape          # batch block, padded slots, tokens
    E = x_ref.shape[-1]
    scale = E ** (-0.5)

    # Hoisted once per grid step: tiny (1, E) LayerNorm / bias rows.
    lnp = [ln_ref[i:i + 1, :] for i in range(6)]
    b = [be_ref[i:i + 1, :] for i in range(10)]
    b1 = b1_ref[...]

    def layernorm(x, g, beta):
        mu = jnp.mean(x, axis=-1, keepdims=True)
        var = jnp.mean(jnp.square(x - mu), axis=-1, keepdims=True)
        return (x - mu) * lax.rsqrt(var + LN_EPS) * g + beta

    def mm(a, w):  # MXU matmul, f32 accumulation; weights pre-cast in the wrapper
        return jnp.dot(a.astype(matmul_dtype), w, preferred_element_type=f32)

    def recip(x):
        return pl.reciprocal(x, approx=True) if approx_recip else 1.0 / x

    # Fused input LayerNorm + k/v projections over all Bt*N tokens of the block;
    # results go to explicit matmul_dtype VMEM scratch (deterministic footprint,
    # no compiler-chosen spills of large traced values across the unrolled loop).
    xn = layernorm(x_ref[...].astype(f32), lnp[_LN_IN_G], lnp[_LN_IN_B])
    if fuse:   # E % 128 == 0: one (E, 2E) matmul; tile-aligned lane slices
        kv = mm(xn, wkv_ref[...])
        k_scr[...] = (kv[:, :E] + b[_BK]).astype(matmul_dtype)
        v_scr[...] = (kv[:, E:] + b[_BV]).astype(matmul_dtype)
    else:
        k_scr[...] = (mm(xn, wkv_ref[0]) + b[_BK]).astype(matmul_dtype)
        v_scr[...] = (mm(xn, wkv_ref[1]) + b[_BV]).astype(matmul_dtype)

    def iteration(slots, write_attn):
        """One slot-attention iteration over the fused (Bt*Kp, E) slot block."""
        slots_prev = slots
        sn = layernorm(slots, lnp[_LN_S_G], lnp[_LN_S_B])
        q = (mm(sn, wq_ref[...]) + b[_BQ]) * scale            # (Bt*Kp, E) f32
        qm = q.astype(matmul_dtype)

        upd = []
        for bi in range(Bt):
            q_b = qm[bi * Kp:(bi + 1) * Kp, :]                 # (Kp, E)
            k_b = k_scr[bi * N:(bi + 1) * N, :]                # (N, E)
            v_b = v_scr[bi * N:(bi + 1) * N, :]                # (N, E)
            # (K, N) layout: slot-softmax is a sublane (K) reduction, over-N
            # renorm a lane reduction, `updates` contracts N with no transpose,
            # and the attn output block is lane-dense in N.
            logits = lax.dot_general(q_b, k_b, (((1,), (1,)), ((), ())),
                                     preferred_element_type=f32)   # (Kp, N)
            if Kp != num_slots:   # padded slot rows: exclude from the K-softmax
                row = lax.broadcasted_iota(jnp.int32, (Kp, N), 0)
                logits = jnp.where(row < num_slots, logits, f32(_NEG_BIG))
            m = jnp.max(logits, axis=0, keepdims=True)
            e = jnp.exp(logits - m)
            attn = e * recip(jnp.sum(e, axis=0, keepdims=True)) + eps
            attn_n = attn * recip(jnp.sum(attn, axis=1, keepdims=True))
            upd.append(jnp.dot(attn_n.astype(matmul_dtype), v_b,
                               preferred_element_type=f32))        # (Kp, E)
            if write_attn:
                attn_out_ref[bi] = attn.astype(attn_out_ref.dtype)
        u = upd[0] if Bt == 1 else jnp.concatenate(upd, axis=0)    # (Bt*Kp, E)

        # GRUCell. fuse: two (E, 3E) matmuls + tile-aligned lane slices; else six
        # lane-aligned (E, E) matmuls (no intra-vreg lane slicing at E % 128 != 0).
        if fuse:
            gi = mm(u, wih_ref[...])
            gh = mm(slots_prev, whh_ref[...])
            r = jax.nn.sigmoid(gi[:, :E] + b[_B_IR] + gh[:, :E] + b[_B_HR])
            z = jax.nn.sigmoid(gi[:, E:2 * E] + b[_B_IZ]
                               + gh[:, E:2 * E] + b[_B_HZ])
            n_g = jnp.tanh(gi[:, 2 * E:] + b[_B_IN]
                           + r * (gh[:, 2 * E:] + b[_B_HN]))
        else:
            r = jax.nn.sigmoid(mm(u, wih_ref[0]) + b[_B_IR]
                               + mm(slots_prev, whh_ref[0]) + b[_B_HR])
            z = jax.nn.sigmoid(mm(u, wih_ref[1]) + b[_B_IZ]
                               + mm(slots_prev, whh_ref[1]) + b[_B_HZ])
            n_g = jnp.tanh(mm(u, wih_ref[2]) + b[_B_IN]
                           + r * (mm(slots_prev, whh_ref[2]) + b[_B_HN]))
        slots = (1.0 - z) * n_g + z * slots_prev

        # Residual MLP, fused over the (Bt*Kp, E) slot block.
        smlp = layernorm(slots, lnp[_LN_M_G], lnp[_LN_M_B])
        h1 = jnp.maximum(mm(smlp, w1_ref[...]) + b1, 0.0)
        return slots + mm(h1, w2_ref[...]) + b[_B2]

    slots = slots0_ref[...].astype(f32)                            # (Bt*Kp, E)
    if iters > 0:
        if iters > 1:
            slots = lax.fori_loop(0, iters - 1,
                                  lambda _, s: iteration(s, False),
                                  slots, unroll=True)
        slots = iteration(slots, True)     # peeled final iteration emits attn
    else:
        # TODO(synk): iters == 0 leaves attn undefined in the PyTorch module;
        # emit zeros here (silent contract choice).
        attn_out_ref[...] = jnp.zeros(attn_out_ref.shape, attn_out_ref.dtype)

    slots_out_ref[...] = slots.astype(slots_out_ref.dtype)


def _pack_params(params, E, fuse, matmul_dtype):
    """Pack parameters; matmul weights pre-cast to matmul_dtype in the wrapper."""
    ln = jnp.concatenate(
        [params[n].reshape(1, E) for n in
         ("ln_in_g", "ln_in_b", "ln_s_g", "ln_s_b", "ln_m_g", "ln_m_b")], axis=0)
    b_ih = params["b_ih"].reshape(3 * E)
    b_hh = params["b_hh"].reshape(3 * E)
    be = jnp.stack(
        [params["bq"].reshape(E), params["bk"].reshape(E), params["bv"].reshape(E),
         b_ih[:E], b_ih[E:2 * E], b_ih[2 * E:],
         b_hh[:E], b_hh[E:2 * E], b_hh[2 * E:],
         params["b2"].reshape(E)], axis=0)
    b1 = params["b1"].reshape(1, 2 * E)

    wq = params["wq"].astype(matmul_dtype)
    w_ih, w_hh = params["w_ih"], params["w_hh"]
    if fuse:   # E % 128 == 0: keep fused layouts, lane slices are tile-aligned
        wkv = jnp.concatenate([params["wk"], params["wv"]], axis=1)   # (E, 2E)
        wih, whh = w_ih, w_hh                                         # (E, 3E)
    else:      # split into lane-aligned (E, E) matrices
        wkv = jnp.stack([params["wk"], params["wv"]], axis=0)          # (2, E, E)
        wih = jnp.stack([w_ih[:, :E], w_ih[:, E:2 * E], w_ih[:, 2 * E:]], axis=0)
        whh = jnp.stack([w_hh[:, :E], w_hh[:, E:2 * E], w_hh[:, 2 * E:]], axis=0)
    wkv = wkv.astype(matmul_dtype)
    wih = wih.astype(matmul_dtype)
    whh = whh.astype(matmul_dtype)
    w1 = params["w1"].astype(matmul_dtype)
    w2 = params["w2"].astype(matmul_dtype)
    return ln, be, b1, wq, wkv, wih, whh, w1, w2


def _vmem_capacity_bytes():
    try:
        return int(pltpu.get_tpu_info().vmem_capacity_bytes)
    except Exception:
        return 64 * 1024 * 1024   # conservative fallback (v7x per-core VMEM)


def _pick_block_b(B, N, Kp, E, mm_itemsize, vmem_budget_bytes, weight_bytes):
    """Largest legal batch block that fits the VMEM budget, with >= 2 grid steps."""
    per_elem = (2 * N * E * 4               # double-buffered f32 input block
                + 2 * N * E * mm_itemsize   # k/v VMEM scratch
                + 4 * Kp * E * 4            # double-buffered slots in + slots out
                + 2 * Kp * N * 4)           # double-buffered attn out
    avail = max(vmem_budget_bytes - 2 * weight_bytes, per_elem)
    bb = int(max(1, min(avail // per_elem, B)))
    if B >= 2:
        bb = min(bb, B // 2)   # >= 2 grid steps: pipeline prefetch + v7x megacore

    def legal(b):   # (8,128) rule: sublane-rows divisible by 8, or full array
        return B % b == 0 and (b == B or (b * N) % 8 == 0)

    while bb > 1 and not legal(bb):
        bb -= 1
    if not legal(bb):
        bb = B                  # N not a multiple of 8: single full-batch block
    return bb


@functools.partial(
    jax.jit,
    static_argnames=("iters", "eps", "block_b", "matmul_dtype", "approx_recip"))
def slot_attention(inputs, slots_init, params, *, iters=3, eps=1e-8,
                   block_b=None, matmul_dtype=jnp.bfloat16, approx_recip=True):
    B, N, E = inputs.shape
    K = slots_init.shape[1]
    Kp = -(-K // 8) * 8                  # pad slot count to a sublane multiple
    fuse = (E % 128 == 0)                # fuse kv / GRU-gate matmuls when aligned
    mm_itemsize = jnp.dtype(matmul_dtype).itemsize

    weights = _pack_params(params, E, fuse, matmul_dtype)
    weight_bytes = sum(a.size * a.dtype.itemsize for a in weights)

    vmem_cap = _vmem_capacity_bytes()
    vmem_limit = int(vmem_cap) * 3 // 4  # ~48 MiB on v7x, ~96 MiB on v5e/v6e
    if block_b is None:
        block_b = _pick_block_b(B, N, Kp, E, mm_itemsize,
                                int(vmem_limit * 0.8), weight_bytes)
    assert B % block_b == 0, "block_b must divide the batch size"

    # Flatten batch into the row (sublane) axis so the projections run as fused
    # matmuls with no in-kernel reshapes; pad K so per-batch slices are 8-aligned.
    x2d = inputs.reshape(B * N, E)
    slots_p = slots_init if Kp == K else jnp.pad(
        slots_init, ((0, 0), (0, Kp - K), (0, 0)))
    s2d = slots_p.reshape(B * Kp, E)

    def rowspec(rows):
        return pl.BlockSpec((rows, E), lambda g: (g, 0))

    def pspec(arr):   # parameters: full block, resident across grid steps
        nd = arr.ndim
        return pl.BlockSpec(arr.shape, lambda g, _nd=nd: (0,) * _nd)

    kernel = functools.partial(
        slot_attention_kernel, iters=iters, eps=eps, num_slots=K,
        matmul_dtype=matmul_dtype, approx_recip=approx_recip, fuse=fuse)

    slots2d, attn_kn = pl.pallas_call(
        kernel,
        out_shape=(jax.ShapeDtypeStruct((B * Kp, E), jnp.float32),
                   jax.ShapeDtypeStruct((B, Kp, N), jnp.float32)),
        grid=(B // block_b,),
        in_specs=[rowspec(block_b * N), rowspec(block_b * Kp)]
                 + [pspec(a) for a in weights],
        out_specs=(rowspec(block_b * Kp),
                   pl.BlockSpec((block_b, Kp, N), lambda g: (g, 0, 0))),
        scratch_shapes=[pltpu.VMEM((block_b * N, E), matmul_dtype),   # k
                        pltpu.VMEM((block_b * N, E), matmul_dtype)],  # v
        compiler_params=pltpu.CompilerParams(
            dimension_semantics=("parallel",),
            vmem_limit_bytes=vmem_limit),
    )(x2d, s2d, *weights)

    # Module output contract: slots (B, K, E), attn (B, N, K); drop padded slots.
    slots = slots2d.reshape(B, Kp, E)[:, :K, :]
    attn = jnp.swapaxes(attn_kn, 1, 2)[:, :, :K]
    return slots, attn


def slot_attention_ref(inputs, slots_init, params, *, iters=3, eps=1e-8):
    """Pure-JAX reference mirroring the PyTorch forward semantics (full f32)."""
    B, N, E = inputs.shape
    p = params

    def ln(x, g, b):
        mu = jnp.mean(x, axis=-1, keepdims=True)
        var = jnp.mean(jnp.square(x - mu), axis=-1, keepdims=True)
        return (x - mu) * lax.rsqrt(var + LN_EPS) * g + b

    with jax.default_matmul_precision("float32"):
        xn = ln(inputs, p["ln_in_g"], p["ln_in_b"])
        k = xn @ p["wk"] + p["bk"]
        v = xn @ p["wv"] + p["bv"]
        slots = slots_init
        attn = jnp.zeros((B, N, slots_init.shape[1]), jnp.float32)
        for _ in range(iters):
            slots_prev = slots
            sn = ln(slots, p["ln_s_g"], p["ln_s_b"])
            q = (sn @ p["wq"] + p["bq"]) * E ** (-0.5)
            logits = jnp.einsum("bne,bke->bnk", k, q)
            attn = jax.nn.softmax(logits, axis=-1) + eps
            attn_norm = attn / jnp.sum(attn, axis=1, keepdims=True)
            updates = jnp.einsum("bnk,bne->bke", attn_norm, v)
            gi = updates @ p["w_ih"] + p["b_ih"]
            gh = slots_prev @ p["w_hh"] + p["b_hh"]
            i_r, i_z, i_n = gi[..., :E], gi[..., E:2 * E], gi[..., 2 * E:]
            h_r, h_z, h_n = gh[..., :E], gh[..., E:2 * E], gh[..., 2 * E:]
            r = jax.nn.sigmoid(i_r + h_r)
            z = jax.nn.sigmoid(i_z + h_z)
            n_g = jnp.tanh(i_n + r * h_n)
            slots = (1.0 - z) * n_g + z * slots_prev
            sm = ln(slots, p["ln_m_g"], p["ln_m_b"])
            slots = slots + jnp.maximum(sm @ p["w1"] + p["b1"], 0.0) @ p["w2"] + p["b2"]
    return slots, attn


def init_params(key, E):
    keys = jax.random.split(key, 16)

    def nrm(k, shape, scale=0.1):
        return (scale * jax.random.normal(k, shape)).astype(jnp.float32)

    return {
        # LayerNorms
        "ln_in_g": jnp.ones((1, E), jnp.float32), "ln_in_b": jnp.zeros((1, E), jnp.float32),
        "ln_s_g": jnp.ones((1, E), jnp.float32), "ln_s_b": jnp.zeros((1, E), jnp.float32),
        "ln_m_g": jnp.ones((1, E), jnp.float32), "ln_m_b": jnp.zeros((1, E), jnp.float32),
        # q/k/v projections, stored (in, out) so y = x @ W + b
        "wq": nrm(keys[0], (E, E)), "bq": nrm(keys[1], (1, E)),
        "wk": nrm(keys[2], (E, E)), "bk": nrm(keys[3], (1, E)),
        "wv": nrm(keys[4], (E, E)), "bv": nrm(keys[5], (1, E)),
        # GRUCell: gates concatenated [r | z | n] along the output axis
        "w_ih": nrm(keys[6], (E, 3 * E)), "b_ih": nrm(keys[7], (1, 3 * E)),
        "w_hh": nrm(keys[8], (E, 3 * E)), "b_hh": nrm(keys[9], (1, 3 * E)),
        # MLP
        "w1": nrm(keys[10], (E, 2 * E)), "b1": nrm(keys[11], (1, 2 * E)),
        "w2": nrm(keys[12], (2 * E, E)), "b2": nrm(keys[13], (1, E)),
    }


if __name__ == "__main__":
    B, N, E, K, ITERS, EPS = 2, 16, 32, 4, 3, 1e-8

    root = jax.random.PRNGKey(0)
    k_in, k_mu, k_sig, k_noise, k_par = jax.random.split(root, 5)

    inputs = jax.random.normal(k_in, (B, N, E), dtype=jnp.float32)

    # TODO(synk): the module samples slots with torch.randn inside forward(); here
    # the stochastic init is done deterministically outside the kernel with JAX PRNG.
    slots_mu = jax.random.normal(k_mu, (1, K, E), dtype=jnp.float32)
    slots_sigma = jnp.abs(jax.random.normal(k_sig, (1, K, E), dtype=jnp.float32))
    noise = jax.random.normal(k_noise, (B, K, E), dtype=jnp.float32)
    slots_init = slots_mu + noise * slots_sigma

    params = init_params(k_par, E)

    slots_r, attn_r = slot_attention_ref(inputs, slots_init, params,
                                         iters=ITERS, eps=EPS)

    # Parity path: f32 matmul operands + exact reciprocals.
    slots_f, attn_f = slot_attention(inputs, slots_init, params, iters=ITERS,
                                     eps=EPS, matmul_dtype=jnp.float32,
                                     approx_recip=False)
    jax.block_until_ready((slots_f, attn_f))
    assert slots_f.shape == (B, K, E) and attn_f.shape == (B, N, K)
    assert jnp.allclose(slots_f, slots_r, rtol=1e-2, atol=1e-2)
    assert jnp.allclose(attn_f, attn_r, rtol=1e-2, atol=1e-2)

    # Default throughput path: bf16 MXU operands + EUP approx reciprocals.
    slots_bf, attn_bf = slot_attention(inputs, slots_init, params,
                                       iters=ITERS, eps=EPS)
    jax.block_until_ready((slots_bf, attn_bf))
    assert slots_bf.shape == (B, K, E) and attn_bf.shape == (B, N, K)
    assert float(jnp.max(jnp.abs(slots_bf - slots_r))) < 0.3
    assert float(jnp.max(jnp.abs(attn_bf - attn_r))) < 0.3

    print("KERNEL_OK")
</pallas_src>

<mosaic_0001>
module attributes {stable_mosaic.version = 11 : i64} {
  func.func @slot_attention_kernel(%arg0: i32, %arg1: memref<16x32xf32, #tpu.memory_space<vmem>>, %arg2: memref<8x32xf32, #tpu.memory_space<vmem>>, %arg3: memref<6x32xf32, #tpu.memory_space<vmem>>, %arg4: memref<10x32xf32, #tpu.memory_space<vmem>>, %arg5: memref<1x64xf32, #tpu.memory_space<vmem>>, %arg6: memref<32x32xf32, #tpu.memory_space<vmem>>, %arg7: memref<2x32x32xf32, #tpu.memory_space<vmem>>, %arg8: memref<3x32x32xf32, #tpu.memory_space<vmem>>, %arg9: memref<3x32x32xf32, #tpu.memory_space<vmem>>, %arg10: memref<32x64xf32, #tpu.memory_space<vmem>>, %arg11: memref<64x32xf32, #tpu.memory_space<vmem>>, %arg12: memref<8x32xf32, #tpu.memory_space<vmem>>, %arg13: memref<1x8x16xf32, #tpu.memory_space<vmem>>, %arg14: memref<16x32xf32, #tpu.memory_space<vmem>>, %arg15: memref<16x32xf32, #tpu.memory_space<vmem>>) attributes {dimension_semantics = [#tpu.dimension_semantics<parallel>], iteration_bounds = array<i64: 2>, scalar_prefetch = 0 : i64, scratch_operands = 2 : i64, tpu.core_type = #tpu.core_type<tc>, window_params = [{transform_indices = @transform_0, window_bounds = array<i64: 16, 32>}, {transform_indices = @transform_1, window_bounds = array<i64: 8, 32>}, {pipeline_mode = #tpu.pipeline_mode<synchronous>, transform_indices = @transform_2, window_bounds = array<i64: 6, 32>}, {pipeline_mode = #tpu.pipeline_mode<synchronous>, transform_indices = @transform_3, window_bounds = array<i64: 10, 32>}, {pipeline_mode = #tpu.pipeline_mode<synchronous>, transform_indices = @transform_4, window_bounds = array<i64: 1, 64>}, {pipeline_mode = #tpu.pipeline_mode<synchronous>, transform_indices = @transform_5, window_bounds = array<i64: 32, 32>}, {pipeline_mode = #tpu.pipeline_mode<synchronous>, transform_indices = @transform_6, window_bounds = array<i64: 2, 32, 32>}, {pipeline_mode = #tpu.pipeline_mode<synchronous>, transform_indices = @transform_7, window_bounds = array<i64: 3, 32, 32>}, {pipeline_mode = #tpu.pipeline_mode<synchronous>, transform_indices = @transform_8, window_bounds = array<i64: 3, 32, 32>}, {pipeline_mode = #tpu.pipeline_mode<synchronous>, transform_indices = @transform_9, window_bounds = array<i64: 32, 64>}, {pipeline_mode = #tpu.pipeline_mode<synchronous>, transform_indices = @transform_10, window_bounds = array<i64: 64, 32>}, {transform_indices = @transform_11, window_bounds = array<i64: 8, 32>}, {transform_indices = @transform_12, window_bounds = array<i64: 1, 8, 16>}]} {
    %c0 = arith.constant 0 : index
    %c0_0 = arith.constant 0 : index
    %0 = vector.load %arg3[%c0, %c0_0] : memref<6x32xf32, #tpu.memory_space<vmem>>, vector<1x32xf32>
    %c1 = arith.constant 1 : index
    %c0_1 = arith.constant 0 : index
    %1 = vector.load %arg3[%c1, %c0_1] : memref<6x32xf32, #tpu.memory_space<vmem>>, vector<1x32xf32>
    %c2 = arith.constant 2 : index
    %c0_2 = arith.constant 0 : index
    %2 = vector.load %arg3[%c2, %c0_2] : memref<6x32xf32, #tpu.memory_space<vmem>>, vector<1x32xf32>
    %c3 = arith.constant 3 : index
    %c0_3 = arith.constant 0 : index
    %3 = vector.load %arg3[%c3, %c0_3] : memref<6x32xf32, #tpu.memory_space<vmem>>, vector<1x32xf32>
    %c4 = arith.constant 4 : index
    %c0_4 = arith.constant 0 : index
    %4 = vector.load %arg3[%c4, %c0_4] : memref<6x32xf32, #tpu.memory_space<vmem>>, vector<1x32xf32>
    %c5 = arith.constant 5 : index
    %c0_5 = arith.constant 0 : index
    %5 = vector.load %arg3[%c5, %c0_5] : memref<6x32xf32, #tpu.memory_space<vmem>>, vector<1x32xf32>
    %c0_6 = arith.constant 0 : index
    %c0_7 = arith.constant 0 : index
    %6 = vector.load %arg4[%c0_6, %c0_7] : memref<10x32xf32, #tpu.memory_space<vmem>>, vector<1x32xf32>
    %c1_8 = arith.constant 1 : index
    %c0_9 = arith.constant 0 : index
    %7 = vector.load %arg4[%c1_8, %c0_9] : memref<10x32xf32, #tpu.memory_space<vmem>>, vector<1x32xf32>
    %c2_10 = arith.constant 2 : index
    %c0_11 = arith.constant 0 : index
    %8 = vector.load %arg4[%c2_10, %c0_11] : memref<10x32xf32, #tpu.memory_space<vmem>>, vector<1x32xf32>
    %c3_12 = arith.constant 3 : index
    %c0_13 = arith.constant 0 : index
    %9 = vector.load %arg4[%c3_12, %c0_13] : memref<10x32xf32, #tpu.memory_space<vmem>>, vector<1x32xf32>
    %c4_14 = arith.constant 4 : index
    %c0_15 = arith.constant 0 : index
    %10 = vector.load %arg4[%c4_14, %c0_15] : memref<10x32xf32, #tpu.memory_space<vmem>>, vector<1x32xf32>
    %c5_16 = arith.constant 5 : index
    %c0_17 = arith.constant 0 : index
    %11 = vector.load %arg4[%c5_16, %c0_17] : memref<10x32xf32, #tpu.memory_space<vmem>>, vector<1x32xf32>
    %c6 = arith.constant 6 : index
    %c0_18 = arith.constant 0 : index
    %12 = vector.load %arg4[%c6, %c0_18] : memref<10x32xf32, #tpu.memory_space<vmem>>, vector<1x32xf32>
    %c7 = arith.constant 7 : index
    %c0_19 = arith.constant 0 : index
    %13 = vector.load %arg4[%c7, %c0_19] : memref<10x32xf32, #tpu.memory_space<vmem>>, vector<1x32xf32>
    %c8 = arith.constant 8 : index
    %c0_20 = arith.constant 0 : index
    %14 = vector.load %arg4[%c8, %c0_20] : memref<10x32xf32, #tpu.memory_space<vmem>>, vector<1x32xf32>
    %c9 = arith.constant 9 : index
    %c0_21 = arith.constant 0 : index
    %15 = vector.load %arg4[%c9, %c0_21] : memref<10x32xf32, #tpu.memory_space<vmem>>, vector<1x32xf32>
    %c0_22 = arith.constant 0 : index
    %c0_23 = arith.constant 0 : index
    %16 = vector.load %arg5[%c0_22, %c0_23] : memref<1x64xf32, #tpu.memory_space<vmem>>, vector<1x64xf32>
    %c0_24 = arith.constant 0 : index
    %c0_25 = arith.constant 0 : index
    %17 = vector.load %arg1[%c0_24, %c0_25] : memref<16x32xf32, #tpu.memory_space<vmem>>, vector<16x32xf32>
    %cst = arith.constant dense<0.000000e+00> : vector<16xf32>
    %18 = vector.multi_reduction <add>, %17, %cst [1] : vector<16x32xf32> to vector<16xf32>
    %19 = vector.shape_cast %18 : vector<16xf32> to vector<16x1xf32>
    %cst_26 = arith.constant 3.200000e+01 : f32
    %20 = vector.broadcast %cst_26 : f32 to vector<16x1xf32>
    %21 = arith.divf %19, %20 : vector<16x1xf32>
    %22 = vector.broadcast %21 : vector<16x1xf32> to vector<16x32xf32>
    %23 = arith.subf %17, %22 : vector<16x32xf32>
    %24 = arith.mulf %23, %23 : vector<16x32xf32>
    %cst_27 = arith.constant dense<0.000000e+00> : vector<16xf32>
    %25 = vector.multi_reduction <add>, %24, %cst_27 [1] : vector<16x32xf32> to vector<16xf32>
    %26 = vector.shape_cast %25 : vector<16xf32> to vector<16x1xf32>
    %cst_28 = arith.constant 3.200000e+01 : f32
    %27 = vector.broadcast %cst_28 : f32 to vector<16x1xf32>
    %28 = arith.divf %26, %27 : vector<16x1xf32>
    %29 = vector.broadcast %21 : vector<16x1xf32> to vector<16x32xf32>
    %30 = arith.subf %17, %29 : vector<16x32xf32>
    %cst_29 = arith.constant 9.99999974E-6 : f32
    %31 = vector.broadcast %cst_29 : f32 to vector<16x1xf32>
    %32 = arith.addf %28, %31 : vector<16x1xf32>
    %33 = math.rsqrt %32 : vector<16x1xf32>
    %34 = vector.broadcast %33 : vector<16x1xf32> to vector<16x32xf32>
    %35 = arith.mulf %30, %34 : vector<16x32xf32>
    %36 = vector.broadcast %0 : vector<1x32xf32> to vector<16x32xf32>
    %37 = arith.mulf %35, %36 : vector<16x32xf32>
    %38 = vector.broadcast %1 : vector<1x32xf32> to vector<16x32xf32>
    %39 = arith.addf %37, %38 : vector<16x32xf32>
    %c0_30 = arith.constant 0 : index
    %c0_31 = arith.constant 0 : index
    %c0_32 = arith.constant 0 : index
    %40 = vector.load %arg7[%c0_30, %c0_31, %c0_32] : memref<2x32x32xf32, #tpu.memory_space<vmem>>, vector<1x32x32xf32>
    %41 = vector.shape_cast %40 : vector<1x32x32xf32> to vector<32x32xf32>
    %cst_33 = arith.constant dense<0.000000e+00> : vector<16x32xf32>
    %42 = tpu.matmul %39, %41, %cst_33 {dimension_numbers = #tpu.dot_dimension_numbers<[1], [0], [0], [1], [0, 0, 1, 1], [], []>} : vector<16x32xf32>, vector<32x32xf32>, vector<16x32xf32> -> vector<16x32xf32>
    %43 = vector.broadcast %7 : vector<1x32xf32> to vector<16x32xf32>
    %44 = arith.addf %42, %43 : vector<16x32xf32>
    %c0_34 = arith.constant 0 : index
    %c0_35 = arith.constant 0 : index
    %45 = vector.load %arg14[%c0_34, %c0_35] : memref<16x32xf32, #tpu.memory_space<vmem>>, vector<16x32xf32>
    tpu.vector_store %arg14[%c0_34, %c0_35], %44 {strides = array<i32>} : memref<16x32xf32, #tpu.memory_space<vmem>>, vector<16x32xf32>,
    %c1_36 = arith.constant 1 : index
    %c0_37 = arith.constant 0 : index
    %c0_38 = arith.constant 0 : index
    %46 = vector.load %arg7[%c1_36, %c0_37, %c0_38] : memref<2x32x32xf32, #tpu.memory_space<vmem>>, vector<1x32x32xf32>
    %47 = vector.shape_cast %46 : vector<1x32x32xf32> to vector<32x32xf32>
    %cst_39 = arith.constant dense<0.000000e+00> : vector<16x32xf32>
    %48 = tpu.matmul %39, %47, %cst_39 {dimension_numbers = #tpu.dot_dimension_numbers<[1], [0], [0], [1], [0, 0, 1, 1], [], []>} : vector<16x32xf32>, vector<32x32xf32>, vector<16x32xf32> -> vector<16x32xf32>
    %49 = vector.broadcast %8 : vector<1x32xf32> to vector<16x32xf32>
    %50 = arith.addf %48, %49 : vector<16x32xf32>
    %c0_40 = arith.constant 0 : index
    %c0_41 = arith.constant 0 : index
    %51 = vector.load %arg15[%c0_40, %c0_41] : memref<16x32xf32, #tpu.memory_space<vmem>>, vector<16x32xf32>
    tpu.vector_store %arg15[%c0_40, %c0_41], %50 {strides = array<i32>} : memref<16x32xf32, #tpu.memory_space<vmem>>, vector<16x32xf32>,
    %c0_42 = arith.constant 0 : index
    %c0_43 = arith.constant 0 : index
    %52 = vector.load %arg2[%c0_42, %c0_43] : memref<8x32xf32, #tpu.memory_space<vmem>>, vector<8x32xf32>
    %c0_i32 = arith.constant 0 : i32
    %cst_44 = arith.constant dense<0.000000e+00> : vector<8xf32>
    %53 = vector.multi_reduction <add>, %52, %cst_44 [1] : vector<8x32xf32> to vector<8xf32>
    %54 = vector.shape_cast %53 : vector<8xf32> to vector<8x1xf32>
    %cst_45 = arith.constant 3.200000e+01 : f32
    %55 = vector.broadcast %cst_45 : f32 to vector<8x1xf32>
    %56 = arith.divf %54, %55 : vector<8x1xf32>
    %57 = vector.broadcast %56 : vector<8x1xf32> to vector<8x32xf32>
    %58 = arith.subf %52, %57 : vector<8x32xf32>
    %59 = arith.mulf %58, %58 : vector<8x32xf32>
    %cst_46 = arith.constant dense<0.000000e+00> : vector<8xf32>
    %60 = vector.multi_reduction <add>, %59, %cst_46 [1] : vector<8x32xf32> to vector<8xf32>
    %61 = vector.shape_cast %60 : vector<8xf32> to vector<8x1xf32>
    %cst_47 = arith.constant 3.200000e+01 : f32
    %62 = vector.broadcast %cst_47 : f32 to vector<8x1xf32>
    %63 = arith.divf %61, %62 : vector<8x1xf32>
    %64 = vector.broadcast %56 : vector<8x1xf32> to vector<8x32xf32>
    %65 = arith.subf %52, %64 : vector<8x32xf32>
    %cst_48 = arith.constant 9.99999974E-6 : f32
    %66 = vector.broadcast %cst_48 : f32 to vector<8x1xf32>
    %67 = arith.addf %63, %66 : vector<8x1xf32>
    %68 = math.rsqrt %67 : vector<8x1xf32>
    %69 = vector.broadcast %68 : vector<8x1xf32> to vector<8x32xf32>
    %70 = arith.mulf %65, %69 : vector<8x32xf32>
    %71 = vector.broadcast %2 : vector<1x32xf32> to vector<8x32xf32>
    %72 = arith.mulf %70, %71 : vector<8x32xf32>
    %73 = vector.broadcast %3 : vector<1x32xf32> to vector<8x32xf32>
    %74 = arith.addf %72, %73 : vector<8x32xf32>
    %c0_49 = arith.constant 0 : index
    %c0_50 = arith.constant 0 : index
    %75 = vector.load %arg6[%c0_49, %c0_50] : memref<32x32xf32, #tpu.memory_space<vmem>>, vector<32x32xf32>
    %cst_51 = arith.constant dense<0.000000e+00> : vector<8x32xf32>
    %76 = tpu.matmul %74, %75, %cst_51 {dimension_numbers = #tpu.dot_dimension_numbers<[1], [0], [0], [1], [0, 0, 1, 1], [], []>} : vector<8x32xf32>, vector<32x32xf32>, vector<8x32xf32> -> vector<8x32xf32>
    %77 = vector.broadcast %6 : vector<1x32xf32> to vector<8x32xf32>
    %78 = arith.addf %76, %77 : vector<8x32xf32>
    %cst_52 = arith.constant 0.176776692 : f32
    %79 = vector.broadcast %cst_52 : f32 to vector<8x32xf32>
    %80 = arith.mulf %78, %79 : vector<8x32xf32>
    %c0_53 = arith.constant 0 : index
    %c0_54 = arith.constant 0 : index
    %81 = vector.load %arg14[%c0_53, %c0_54] : memref<16x32xf32, #tpu.memory_space<vmem>>, vector<16x32xf32>
    %c0_55 = arith.constant 0 : index
    %c0_56 = arith.constant 0 : index
    %82 = vector.load %arg15[%c0_55, %c0_56] : memref<16x32xf32, #tpu.memory_space<vmem>>, vector<16x32xf32>
    %cst_57 = arith.constant dense<0.000000e+00> : vector<8x16xf32>
    %83 = tpu.matmul %80, %81, %cst_57 {dimension_numbers = #tpu.dot_dimension_numbers<[1], [1], [0], [0], [0, 0, 1, 0], [], []>} : vector<8x32xf32>, vector<16x32xf32>, vector<8x16xf32> -> vector<8x16xf32>
    %84 = tpu.iota {dimensions = array<i32: 0>} : vector<8x16xi32>
    %c4_i32 = arith.constant 4 : i32
    %85 = vector.broadcast %c4_i32 : i32 to vector<8x16xi32>
    %86 = arith.cmpi slt, %84, %85 : vector<8x16xi32>
    %cst_58 = arith.constant -1.000000e+30 : f32
    %87 = vector.broadcast %cst_58 : f32 to vector<8x16xf32>
    %88 = arith.select %86, %83, %87 : vector<8x16xi1>, vector<8x16xf32>
    %cst_59 = arith.constant dense<0xFF800000> : vector<16xf32>
    %89 = vector.multi_reduction <maximumf>, %88, %cst_59 [0] : vector<8x16xf32> to vector<16xf32>
    %90 = vector.shape_cast %89 : vector<16xf32> to vector<1x16xf32>
    %91 = vector.broadcast %90 : vector<1x16xf32> to vector<8x16xf32>
    %92 = arith.subf %88, %91 : vector<8x16xf32>
    %93 = math.exp %92 : vector<8x16xf32>
    %cst_60 = arith.constant dense<0.000000e+00> : vector<16xf32>
    %94 = vector.multi_reduction <add>, %93, %cst_60 [0] : vector<8x16xf32> to vector<16xf32>
    %95 = vector.shape_cast %94 : vector<16xf32> to vector<1x16xf32>
    %cst_61 = arith.constant 1.000000e+00 : f32
    %96 = vector.broadcast %cst_61 : f32 to vector<1x16xf32>
    %97 = arith.divf %96, %95 : vector<1x16xf32>
    %98 = vector.broadcast %97 : vector<1x16xf32> to vector<8x16xf32>
    %99 = arith.mulf %93, %98 : vector<8x16xf32>
    %cst_62 = arith.constant 9.99999993E-9 : f32
    %100 = vector.broadcast %cst_62 : f32 to vector<8x16xf32>
    %101 = arith.addf %99, %100 : vector<8x16xf32>
    %cst_63 = arith.constant dense<0.000000e+00> : vector<8xf32>
    %102 = vector.multi_reduction <add>, %101, %cst_63 [1] : vector<8x16xf32> to vector<8xf32>
    %103 = vector.shape_cast %102 : vector<8xf32> to vector<8x1xf32>
    %cst_64 = arith.constant 1.000000e+00 : f32
    %104 = vector.broadcast %cst_64 : f32 to vector<8x1xf32>
    %105 = arith.divf %104, %103 : vector<8x1xf32>
    %106 = vector.broadcast %105 : vector<8x1xf32> to vector<8x16xf32>
    %107 = arith.mulf %101, %106 : vector<8x16xf32>
    %cst_65 = arith.constant dense<0.000000e+00> : vector<8x32xf32>
    %108 = tpu.matmul %107, %82, %cst_65 {dimension_numbers = #tpu.dot_dimension_numbers<[1], [0], [0], [1], [0, 0, 1, 1], [], []>} : vector<8x16xf32>, vector<16x32xf32>, vector<8x32xf32> -> vector<8x32xf32>
    %c0_66 = arith.constant 0 : index
    %c0_67 = arith.constant 0 : index
    %c0_68 = arith.constant 0 : index
    %109 = vector.load %arg8[%c0_66, %c0_67, %c0_68] : memref<3x32x32xf32, #tpu.memory_space<vmem>>, vector<1x32x32xf32>
    %110 = vector.shape_cast %109 : vector<1x32x32xf32> to vector<32x32xf32>
    %cst_69 = arith.constant dense<0.000000e+00> : vector<8x32xf32>
    %111 = tpu.matmul %108, %110, %cst_69 {dimension_numbers = #tpu.dot_dimension_numbers<[1], [0], [0], [1], [0, 0, 1, 1], [], []>} : vector<8x32xf32>, vector<32x32xf32>, vector<8x32xf32> -> vector<8x32xf32>
    %112 = vector.broadcast %9 : vector<1x32xf32> to vector<8x32xf32>
    %113 = arith.addf %111, %112 : vector<8x32xf32>
    %c0_70 = arith.constant 0 : index
    %c0_71 = arith.constant 0 : index
    %c0_72 = arith.constant 0 : index
    %114 = vector.load %arg9[%c0_70, %c0_71, %c0_72] : memref<3x32x32xf32, #tpu.memory_space<vmem>>, vector<1x32x32xf32>
    %115 = vector.shape_cast %114 : vector<1x32x32xf32> to vector<32x32xf32>
    %cst_73 = arith.constant dense<0.000000e+00> : vector<8x32xf32>
    %116 = tpu.matmul %52, %115, %cst_73 {dimension_numbers = #tpu.dot_dimension_numbers<[1], [0], [0], [1], [0, 0, 1, 1], [], []>} : vector<8x32xf32>, vector<32x32xf32>, vector<8x32xf32> -> vector<8x32xf32>
    %117 = arith.addf %113, %116 : vector<8x32xf32>
    %118 = vector.broadcast %12 : vector<1x32xf32> to vector<8x32xf32>
    %119 = arith.addf %117, %118 : vector<8x32xf32>
    %120 = arith.negf %119 : vector<8x32xf32>
    %121 = math.exp %120 : vector<8x32xf32>
    %cst_74 = arith.constant 1.000000e+00 : f32
    %122 = vector.broadcast %cst_74 : f32 to vector<8x32xf32>
    %123 = arith.addf %122, %121 : vector<8x32xf32>
    %124 = arith.divf %122, %123 : vector<8x32xf32>
    %c1_75 = arith.constant 1 : index
    %c0_76 = arith.constant 0 : index
    %c0_77 = arith.constant 0 : index
    %125 = vector.load %arg8[%c1_75, %c0_76, %c0_77] : memref<3x32x32xf32, #tpu.memory_space<vmem>>, vector<1x32x32xf32>
    %126 = vector.shape_cast %125 : vector<1x32x32xf32> to vector<32x32xf32>
    %cst_78 = arith.constant dense<0.000000e+00> : vector<8x32xf32>
    %127 = tpu.matmul %108, %126, %cst_78 {dimension_numbers = #tpu.dot_dimension_numbers<[1], [0], [0], [1], [0, 0, 1, 1], [], []>} : vector<8x32xf32>, vector<32x32xf32>, vector<8x32xf32> -> vector<8x32xf32>
    %128 = vector.broadcast %10 : vector<1x32xf32> to vector<8x32xf32>
    %129 = arith.addf %127, %128 : vector<8x32xf32>
    %c1_79 = arith.constant 1 : index
    %c0_80 = arith.constant 0 : index
    %c0_81 = arith.constant 0 : index
    %130 = vector.load %arg9[%c1_79, %c0_80, %c0_81] : memref<3x32x32xf32, #tpu.memory_space<vmem>>, vector<1x32x32xf32>
    %131 = vector.shape_cast %130 : vector<1x32x32xf32> to vector<32x32xf32>
    %cst_82 = arith.constant dense<0.000000e+00> : vector<8x32xf32>
    %132 = tpu.matmul %52, %131, %cst_82 {dimension_numbers = #tpu.dot_dimension_numbers<[1], [0], [0], [1], [0, 0, 1, 1], [], []>} : vector<8x32xf32>, vector<32x32xf32>, vector<8x32xf32> -> vector<8x32xf32>
    %133 = arith.addf %129, %132 : vector<8x32xf32>
    %134 = vector.broadcast %13 : vector<1x32xf32> to vector<8x32xf32>
    %135 = arith.addf %133, %134 : vector<8x32xf32>
    %136 = arith.negf %135 : vector<8x32xf32>
    %137 = math.exp %136 : vector<8x32xf32>
    %cst_83 = arith.constant 1.000000e+00 : f32
    %138 = vector.broadcast %cst_83 : f32 to vector<8x32xf32>
    %139 = arith.addf %138, %137 : vector<8x32xf32>
    %140 = arith.divf %138, %139 : vector<8x32xf32>
    %c2_84 = arith.constant 2 : index
    %c0_85 = arith.constant 0 : index
    %c0_86 = arith.constant 0 : index
    %141 = vector.load %arg8[%c2_84, %c0_85, %c0_86] : memref<3x32x32xf32, #tpu.memory_space<vmem>>, vector<1x32x32xf32>
    %142 = vector.shape_cast %141 : vector<1x32x32xf32> to vector<32x32xf32>
    %cst_87 = arith.constant dense<0.000000e+00> : vector<8x32xf32>
    %143 = tpu.matmul %108, %142, %cst_87 {dimension_numbers = #tpu.dot_dimension_numbers<[1], [0], [0], [1], [0, 0, 1, 1], [], []>} : vector<8x32xf32>, vector<32x32xf32>, vector<8x32xf32> -> vector<8x32xf32>
    %144 = vector.broadcast %11 : vector<1x32xf32> to vector<8x32xf32>
    %145 = arith.addf %143, %144 : vector<8x32xf32>
    %c2_88 = arith.constant 2 : index
    %c0_89 = arith.constant 0 : index
    %c0_90 = arith.constant 0 : index
    %146 = vector.load %arg9[%c2_88, %c0_89, %c0_90] : memref<3x32x32xf32, #tpu.memory_space<vmem>>, vector<1x32x32xf32>
    %147 = vector.shape_cast %146 : vector<1x32x32xf32> to vector<32x32xf32>
    %cst_91 = arith.constant dense<0.000000e+00> : vector<8x32xf32>
    %148 = tpu.matmul %52, %147, %cst_91 {dimension_numbers = #tpu.dot_dimension_numbers<[1], [0], [0], [1], [0, 0, 1, 1], [], []>} : vector<8x32xf32>, vector<32x32xf32>, vector<8x32xf32> -> vector<8x32xf32>
    %149 = vector.broadcast %14 : vector<1x32xf32> to vector<8x32xf32>
    %150 = arith.addf %148, %149 : vector<8x32xf32>
    %151 = arith.mulf %124, %150 : vector<8x32xf32>
    %152 = arith.addf %145, %151 : vector<8x32xf32>
    %153 = math.tanh %152 : vector<8x32xf32>
    %cst_92 = arith.constant 1.000000e+00 : f32
    %154 = vector.broadcast %cst_92 : f32 to vector<8x32xf32>
    %155 = arith.subf %154, %140 : vector<8x32xf32>
    %156 = arith.mulf %155, %153 : vector<8x32xf32>
    %157 = arith.mulf %140, %52 : vector<8x32xf32>
    %158 = arith.addf %156, %157 : vector<8x32xf32>
    %cst_93 = arith.constant dense<0.000000e+00> : vector<8xf32>
    %159 = vector.multi_reduction <add>, %158, %cst_93 [1] : vector<8x32xf32> to vector<8xf32>
    %160 = vector.shape_cast %159 : vector<8xf32> to vector<8x1xf32>
    %cst_94 = arith.constant 3.200000e+01 : f32
    %161 = vector.broadcast %cst_94 : f32 to vector<8x1xf32>
    %162 = arith.divf %160, %161 : vector<8x1xf32>
    %163 = vector.broadcast %162 : vector<8x1xf32> to vector<8x32xf32>
    %164 = arith.subf %158, %163 : vector<8x32xf32>
    %165 = arith.mulf %164, %164 : vector<8x32xf32>
    %cst_95 = arith.constant dense<0.000000e+00> : vector<8xf32>
    %166 = vector.multi_reduction <add>, %165, %cst_95 [1] : vector<8x32xf32> to vector<8xf32>
    %167 = vector.shape_cast %166 : vector<8xf32> to vector<8x1xf32>
    %cst_96 = arith.constant 3.200000e+01 : f32
    %168 = vector.broadcast %cst_96 : f32 to vector<8x1xf32>
    %169 = arith.divf %167, %168 : vector<8x1xf32>
    %170 = vector.broadcast %162 : vector<8x1xf32> to vector<8x32xf32>
    %171 = arith.subf %158, %170 : vector<8x32xf32>
    %cst_97 = arith.constant 9.99999974E-6 : f32
    %172 = vector.broadcast %cst_97 : f32 to vector<8x1xf32>
    %173 = arith.addf %169, %172 : vector<8x1xf32>
    %174 = math.rsqrt %173 : vector<8x1xf32>
    %175 = vector.broadcast %174 : vector<8x1xf32> to vector<8x32xf32>
    %176 = arith.mulf %171, %175 : vector<8x32xf32>
    %177 = vector.broadcast %4 : vector<1x32xf32> to vector<8x32xf32>
    %178 = arith.mulf %176, %177 : vector<8x32xf32>
    %179 = vector.broadcast %5 : vector<1x32xf32> to vector<8x32xf32>
    %180 = arith.addf %178, %179 : vector<8x32xf32>
    %c0_98 = arith.constant 0 : index
    %c0_99 = arith.constant 0 : index
    %181 = vector.load %arg10[%c0_98, %c0_99] : memref<32x64xf32, #tpu.memory_space<vmem>>, vector<32x64xf32>
    %cst_100 = arith.constant dense<0.000000e+00> : vector<8x64xf32>
    %182 = tpu.matmul %180, %181, %cst_100 {dimension_numbers = #tpu.dot_dimension_numbers<[1], [0], [0], [1], [0, 0, 1, 1], [], []>} : vector<8x32xf32>, vector<32x64xf32>, vector<8x64xf32> -> vector<8x64xf32>
    %183 = vector.broadcast %16 : vector<1x64xf32> to vector<8x64xf32>
    %184 = arith.addf %182, %183 : vector<8x64xf32>
    %cst_101 = arith.constant 0.000000e+00 : f32
    %185 = vector.broadcast %cst_101 : f32 to vector<8x64xf32>
    %186 = arith.maximumf %184, %185 : vector<8x64xf32>
    %c0_102 = arith.constant 0 : index
    %c0_103 = arith.constant 0 : index
    %187 = vector.load %arg11[%c0_102, %c0_103] : memref<64x32xf32, #tpu.memory_space<vmem>>, vector<64x32xf32>
    %cst_104 = arith.constant dense<0.000000e+00> : vector<8x32xf32>
    %188 = tpu.matmul %186, %187, %cst_104 {dimension_numbers = #tpu.dot_dimension_numbers<[1], [0], [0], [1], [0, 0, 1, 1], [], []>} : vector<8x64xf32>, vector<64x32xf32>, vector<8x32xf32> -> vector<8x32xf32>
    %189 = arith.addf %158, %188 : vector<8x32xf32>
    %190 = vector.broadcast %15 : vector<1x32xf32> to vector<8x32xf32>
    %191 = arith.addf %189, %190 : vector<8x32xf32>
    %c1_i32 = arith.constant 1 : i32
    %cst_105 = arith.constant dense<0.000000e+00> : vector<8xf32>
    %192 = vector.multi_reduction <add>, %191, %cst_105 [1] : vector<8x32xf32> to vector<8xf32>
    %193 = vector.shape_cast %192 : vector<8xf32> to vector<8x1xf32>
    %cst_106 = arith.constant 3.200000e+01 : f32
    %194 = vector.broadcast %cst_106 : f32 to vector<8x1xf32>
    %195 = arith.divf %193, %194 : vector<8x1xf32>
    %196 = vector.broadcast %195 : vector<8x1xf32> to vector<8x32xf32>
    %197 = arith.subf %191, %196 : vector<8x32xf32>
    %198 = arith.mulf %197, %197 : vector<8x32xf32>
    %cst_107 = arith.constant dense<0.000000e+00> : vector<8xf32>
    %199 = vector.multi_reduction <add>, %198, %cst_107 [1] : vector<8x32xf32> to vector<8xf32>
    %200 = vector.shape_cast %199 : vector<8xf32> to vector<8x1xf32>
    %cst_108 = arith.constant 3.200000e+01 : f32
    %201 = vector.broadcast %cst_108 : f32 to vector<8x1xf32>
    %202 = arith.divf %200, %201 : vector<8x1xf32>
    %203 = vector.broadcast %195 : vector<8x1xf32> to vector<8x32xf32>
    %204 = arith.subf %191, %203 : vector<8x32xf32>
    %cst_109 = arith.constant 9.99999974E-6 : f32
    %205 = vector.broadcast %cst_109 : f32 to vector<8x1xf32>
    %206 = arith.addf %202, %205 : vector<8x1xf32>
    %207 = math.rsqrt %206 : vector<8x1xf32>
    %208 = vector.broadcast %207 : vector<8x1xf32> to vector<8x32xf32>
    %209 = arith.mulf %204, %208 : vector<8x32xf32>
    %210 = vector.broadcast %2 : vector<1x32xf32> to vector<8x32xf32>
    %211 = arith.mulf %209, %210 : vector<8x32xf32>
    %212 = vector.broadcast %3 : vector<1x32xf32> to vector<8x32xf32>
    %213 = arith.addf %211, %212 : vector<8x32xf32>
    %c0_110 = arith.constant 0 : index
    %c0_111 = arith.constant 0 : index
    %214 = vector.load %arg6[%c0_110, %c0_111] : memref<32x32xf32, #tpu.memory_space<vmem>>, vector<32x32xf32>
    %cst_112 = arith.constant dense<0.000000e+00> : vector<8x32xf32>
    %215 = tpu.matmul %213, %214, %cst_112 {dimension_numbers = #tpu.dot_dimension_numbers<[1], [0], [0], [1], [0, 0, 1, 1], [], []>} : vector<8x32xf32>, vector<32x32xf32>, vector<8x32xf32> -> vector<8x32xf32>
    %216 = vector.broadcast %6 : vector<1x32xf32> to vector<8x32xf32>
    %217 = arith.addf %215, %216 : vector<8x32xf32>
    %cst_113 = arith.constant 0.176776692 : f32
    %218 = vector.broadcast %cst_113 : f32 to vector<8x32xf32>
    %219 = arith.mulf %217, %218 : vector<8x32xf32>
    %c0_114 = arith.constant 0 : index
    %c0_115 = arith.constant 0 : index
    %220 = vector.load %arg14[%c0_114, %c0_115] : memref<16x32xf32, #tpu.memory_space<vmem>>, vector<16x32xf32>
    %c0_116 = arith.constant 0 : index
    %c0_117 = arith.constant 0 : index
    %221 = vector.load %arg15[%c0_116, %c0_117] : memref<16x32xf32, #tpu.memory_space<vmem>>, vector<16x32xf32>
    %cst_118 = arith.constant dense<0.000000e+00> : vector<8x16xf32>
    %222 = tpu.matmul %219, %220, %cst_118 {dimension_numbers = #tpu.dot_dimension_numbers<[1], [1], [0], [0], [0, 0, 1, 0], [], []>} : vector<8x32xf32>, vector<16x32xf32>, vector<8x16xf32> -> vector<8x16xf32>
    %223 = tpu.iota {dimensions = array<i32: 0>} : vector<8x16xi32>
    %c4_i32_119 = arith.constant 4 : i32
    %224 = vector.broadcast %c4_i32_119 : i32 to vector<8x16xi32>
    %225 = arith.cmpi slt, %223, %224 : vector<8x16xi32>
    %cst_120 = arith.constant -1.000000e+30 : f32
    %226 = vector.broadcast %cst_120 : f32 to vector<8x16xf32>
    %227 = arith.select %225, %222, %226 : vector<8x16xi1>, vector<8x16xf32>
    %cst_121 = arith.constant dense<0xFF800000> : vector<16xf32>
    %228 = vector.multi_reduction <maximumf>, %227, %cst_121 [0] : vector<8x16xf32> to vector<16xf32>
    %229 = vector.shape_cast %228 : vector<16xf32> to vector<1x16xf32>
    %230 = vector.broadcast %229 : vector<1x16xf32> to vector<8x16xf32>
    %231 = arith.subf %227, %230 : vector<8x16xf32>
    %232 = math.exp %231 : vector<8x16xf32>
    %cst_122 = arith.constant dense<0.000000e+00> : vector<16xf32>
    %233 = vector.multi_reduction <add>, %232, %cst_122 [0] : vector<8x16xf32> to vector<16xf32>
    %234 = vector.shape_cast %233 : vector<16xf32> to vector<1x16xf32>
    %cst_123 = arith.constant 1.000000e+00 : f32
    %235 = vector.broadcast %cst_123 : f32 to vector<1x16xf32>
    %236 = arith.divf %235, %234 : vector<1x16xf32>
    %237 = vector.broadcast %236 : vector<1x16xf32> to vector<8x16xf32>
    %238 = arith.mulf %232, %237 : vector<8x16xf32>
    %cst_124 = arith.constant 9.99999993E-9 : f32
    %239 = vector.broadcast %cst_124 : f32 to vector<8x16xf32>
    %240 = arith.addf %238, %239 : vector<8x16xf32>
    %cst_125 = arith.constant dense<0.000000e+00> : vector<8xf32>
    %241 = vector.multi_reduction <add>, %240, %cst_125 [1] : vector<8x16xf32> to vector<8xf32>
    %242 = vector.shape_cast %241 : vector<8xf32> to vector<8x1xf32>
    %cst_126 = arith.constant 1.000000e+00 : f32
    %243 = vector.broadcast %cst_126 : f32 to vector<8x1xf32>
    %244 = arith.divf %243, %242 : vector<8x1xf32>
    %245 = vector.broadcast %244 : vector<8x1xf32> to vector<8x16xf32>
    %246 = arith.mulf %240, %245 : vector<8x16xf32>
    %cst_127 = arith.constant dense<0.000000e+00> : vector<8x32xf32>
    %247 = tpu.matmul %246, %221, %cst_127 {dimension_numbers = #tpu.dot_dimension_numbers<[1], [0], [0], [1], [0, 0, 1, 1], [], []>} : vector<8x16xf32>, vector<16x32xf32>, vector<8x32xf32> -> vector<8x32xf32>
    %c0_128 = arith.constant 0 : index
    %c0_129 = arith.constant 0 : index
    %c0_130 = arith.constant 0 : index
    %248 = vector.load %arg8[%c0_128, %c0_129, %c0_130] : memref<3x32x32xf32, #tpu.memory_space<vmem>>, vector<1x32x32xf32>
    %249 = vector.shape_cast %248 : vector<1x32x32xf32> to vector<32x32xf32>
    %cst_131 = arith.constant dense<0.000000e+00> : vector<8x32xf32>
    %250 = tpu.matmul %247, %249, %cst_131 {dimension_numbers = #tpu.dot_dimension_numbers<[1], [0], [0], [1], [0, 0, 1, 1], [], []>} : vector<8x32xf32>, vector<32x32xf32>, vector<8x32xf32> -> vector<8x32xf32>
    %251 = vector.broadcast %9 : vector<1x32xf32> to vector<8x32xf32>
    %252 = arith.addf %250, %251 : vector<8x32xf32>
    %c0_132 = arith.constant 0 : index
    %c0_133 = arith.constant 0 : index
    %c0_134 = arith.constant 0 : index
    %253 = vector.load %arg9[%c0_132, %c0_133, %c0_134] : memref<3x32x32xf32, #tpu.memory_space<vmem>>, vector<1x32x32xf32>
    %254 = vector.shape_cast %253 : vector<1x32x32xf32> to vector<32x32xf32>
    %cst_135 = arith.constant dense<0.000000e+00> : vector<8x32xf32>
    %255 = tpu.matmul %191, %254, %cst_135 {dimension_numbers = #tpu.dot_dimension_numbers<[1], [0], [0], [1], [0, 0, 1, 1], [], []>} : vector<8x32xf32>, vector<32x32xf32>, vector<8x32xf32> -> vector<8x32xf32>
    %256 = arith.addf %252, %255 : vector<8x32xf32>
    %257 = vector.broadcast %12 : vector<1x32xf32> to vector<8x32xf32>
    %258 = arith.addf %256, %257 : vector<8x32xf32>
    %259 = arith.negf %258 : vector<8x32xf32>
    %260 = math.exp %259 : vector<8x32xf32>
    %cst_136 = arith.constant 1.000000e+00 : f32
    %261 = vector.broadcast %cst_136 : f32 to vector<8x32xf32>
    %262 = arith.addf %261, %260 : vector<8x32xf32>
    %263 = arith.divf %261, %262 : vector<8x32xf32>
    %c1_137 = arith.constant 1 : index
    %c0_138 = arith.constant 0 : index
    %c0_139 = arith.constant 0 : index
    %264 = vector.load %arg8[%c1_137, %c0_138, %c0_139] : memref<3x32x32xf32, #tpu.memory_space<vmem>>, vector<1x32x32xf32>
    %265 = vector.shape_cast %264 : vector<1x32x32xf32> to vector<32x32xf32>
    %cst_140 = arith.constant dense<0.000000e+00> : vector<8x32xf32>
    %266 = tpu.matmul %247, %265, %cst_140 {dimension_numbers = #tpu.dot_dimension_numbers<[1], [0], [0], [1], [0, 0, 1, 1], [], []>} : vector<8x32xf32>, vector<32x32xf32>, vector<8x32xf32> -> vector<8x32xf32>
    %267 = vector.broadcast %10 : vector<1x32xf32> to vector<8x32xf32>
    %268 = arith.addf %266, %267 : vector<8x32xf32>
    %c1_141 = arith.constant 1 : index
    %c0_142 = arith.constant 0 : index
    %c0_143 = arith.constant 0 : index
    %269 = vector.load %arg9[%c1_141, %c0_142, %c0_143] : memref<3x32x32xf32, #tpu.memory_space<vmem>>, vector<1x32x32xf32>
    %270 = vector.shape_cast %269 : vector<1x32x32xf32> to vector<32x32xf32>
    %cst_144 = arith.constant dense<0.000000e+00> : vector<8x32xf32>
    %271 = tpu.matmul %191, %270, %cst_144 {dimension_numbers = #tpu.dot_dimension_numbers<[1], [0], [0], [1], [0, 0, 1, 1], [], []>} : vector<8x32xf32>, vector<32x32xf32>, vector<8x32xf32> -> vector<8x32xf32>
    %272 = arith.addf %268, %271 : vector<8x32xf32>
    %273 = vector.broadcast %13 : vector<1x32xf32> to vector<8x32xf32>
    %274 = arith.addf %272, %273 : vector<8x32xf32>
    %275 = arith.negf %274 : vector<8x32xf32>
    %276 = math.exp %275 : vector<8x32xf32>
    %cst_145 = arith.constant 1.000000e+00 : f32
    %277 = vector.broadcast %cst_145 : f32 to vector<8x32xf32>
    %278 = arith.addf %277, %276 : vector<8x32xf32>
    %279 = arith.divf %277, %278 : vector<8x32xf32>
    %c2_146 = arith.constant 2 : index
    %c0_147 = arith.constant 0 : index
    %c0_148 = arith.constant 0 : index
    %280 = vector.load %arg8[%c2_146, %c0_147, %c0_148] : memref<3x32x32xf32, #tpu.memory_space<vmem>>, vector<1x32x32xf32>
    %281 = vector.shape_cast %280 : vector<1x32x32xf32> to vector<32x32xf32>
    %cst_149 = arith.constant dense<0.000000e+00> : vector<8x32xf32>
    %282 = tpu.matmul %247, %281, %cst_149 {dimension_numbers = #tpu.dot_dimension_numbers<[1], [0], [0], [1], [0, 0, 1, 1], [], []>} : vector<8x32xf32>, vector<32x32xf32>, vector<8x32xf32> -> vector<8x32xf32>
    %283 = vector.broadcast %11 : vector<1x32xf32> to vector<8x32xf32>
    %284 = arith.addf %282, %283 : vector<8x32xf32>
    %c2_150 = arith.constant 2 : index
    %c0_151 = arith.constant 0 : index
    %c0_152 = arith.constant 0 : index
    %285 = vector.load %arg9[%c2_150, %c0_151, %c0_152] : memref<3x32x32xf32, #tpu.memory_space<vmem>>, vector<1x32x32xf32>
    %286 = vector.shape_cast %285 : vector<1x32x32xf32> to vector<32x32xf32>
    %cst_153 = arith.constant dense<0.000000e+00> : vector<8x32xf32>
    %287 = tpu.matmul %191, %286, %cst_153 {dimension_numbers = #tpu.dot_dimension_numbers<[1], [0], [0], [1], [0, 0, 1, 1], [], []>} : vector<8x32xf32>, vector<32x32xf32>, vector<8x32xf32> -> vector<8x32xf32>
    %288 = vector.broadcast %14 : vector<1x32xf32> to vector<8x32xf32>
    %289 = arith.addf %287, %288 : vector<8x32xf32>
    %290 = arith.mulf %263, %289 : vector<8x32xf32>
    %291 = arith.addf %284, %290 : vector<8x32xf32>
    %292 = math.tanh %291 : vector<8x32xf32>
    %cst_154 = arith.constant 1.000000e+00 : f32
    %293 = vector.broadcast %cst_154 : f32 to vector<8x32xf32>
    %294 = arith.subf %293, %279 : vector<8x32xf32>
    %295 = arith.mulf %294, %292 : vector<8x32xf32>
    %296 = arith.mulf %279, %191 : vector<8x32xf32>
    %297 = arith.addf %295, %296 : vector<8x32xf32>
    %cst_155 = arith.constant dense<0.000000e+00> : vector<8xf32>
    %298 = vector.multi_reduction <add>, %297, %cst_155 [1] : vector<8x32xf32> to vector<8xf32>
    %299 = vector.shape_cast %298 : vector<8xf32> to vector<8x1xf32>
    %cst_156 = arith.constant 3.200000e+01 : f32
    %300 = vector.broadcast %cst_156 : f32 to vector<8x1xf32>
    %301 = arith.divf %299, %300 : vector<8x1xf32>
    %302 = vector.broadcast %301 : vector<8x1xf32> to vector<8x32xf32>
    %303 = arith.subf %297, %302 : vector<8x32xf32>
    %304 = arith.mulf %303, %303 : vector<8x32xf32>
    %cst_157 = arith.constant dense<0.000000e+00> : vector<8xf32>
    %305 = vector.multi_reduction <add>, %304, %cst_157 [1] : vector<8x32xf32> to vector<8xf32>
    %306 = vector.shape_cast %305 : vector<8xf32> to vector<8x1xf32>
    %cst_158 = arith.constant 3.200000e+01 : f32
    %307 = vector.broadcast %cst_158 : f32 to vector<8x1xf32>
    %308 = arith.divf %306, %307 : vector<8x1xf32>
    %309 = vector.broadcast %301 : vector<8x1xf32> to vector<8x32xf32>
    %310 = arith.subf %297, %309 : vector<8x32xf32>
    %cst_159 = arith.constant 9.99999974E-6 : f32
    %311 = vector.broadcast %cst_159 : f32 to vector<8x1xf32>
    %312 = arith.addf %308, %311 : vector<8x1xf32>
    %313 = math.rsqrt %312 : vector<8x1xf32>
    %314 = vector.broadcast %313 : vector<8x1xf32> to vector<8x32xf32>
    %315 = arith.mulf %310, %314 : vector<8x32xf32>
    %316 = vector.broadcast %4 : vector<1x32xf32> to vector<8x32xf32>
    %317 = arith.mulf %315, %316 : vector<8x32xf32>
    %318 = vector.broadcast %5 : vector<1x32xf32> to vector<8x32xf32>
    %319 = arith.addf %317, %318 : vector<8x32xf32>
    %c0_160 = arith.constant 0 : index
    %c0_161 = arith.constant 0 : index
    %320 = vector.load %arg10[%c0_160, %c0_161] : memref<32x64xf32, #tpu.memory_space<vmem>>, vector<32x64xf32>
    %cst_162 = arith.constant dense<0.000000e+00> : vector<8x64xf32>
    %321 = tpu.matmul %319, %320, %cst_162 {dimension_numbers = #tpu.dot_dimension_numbers<[1], [0], [0], [1], [0, 0, 1, 1], [], []>} : vector<8x32xf32>, vector<32x64xf32>, vector<8x64xf32> -> vector<8x64xf32>
    %322 = vector.broadcast %16 : vector<1x64xf32> to vector<8x64xf32>
    %323 = arith.addf %321, %322 : vector<8x64xf32>
    %cst_163 = arith.constant 0.000000e+00 : f32
    %324 = vector.broadcast %cst_163 : f32 to vector<8x64xf32>
    %325 = arith.maximumf %323, %324 : vector<8x64xf32>
    %c0_164 = arith.constant 0 : index
    %c0_165 = arith.constant 0 : index
    %326 = vector.load %arg11[%c0_164, %c0_165] : memref<64x32xf32, #tpu.memory_space<vmem>>, vector<64x32xf32>
    %cst_166 = arith.constant dense<0.000000e+00> : vector<8x32xf32>
    %327 = tpu.matmul %325, %326, %cst_166 {dimension_numbers = #tpu.dot_dimension_numbers<[1], [0], [0], [1], [0, 0, 1, 1], [], []>} : vector<8x64xf32>, vector<64x32xf32>, vector<8x32xf32> -> vector<8x32xf32>
    %328 = arith.addf %297, %327 : vector<8x32xf32>
    %329 = vector.broadcast %15 : vector<1x32xf32> to vector<8x32xf32>
    %330 = arith.addf %328, %329 : vector<8x32xf32>
    %cst_167 = arith.constant dense<0.000000e+00> : vector<8xf32>
    %331 = vector.multi_reduction <add>, %330, %cst_167 [1] : vector<8x32xf32> to vector<8xf32>
    %332 = vector.shape_cast %331 : vector<8xf32> to vector<8x1xf32>
    %cst_168 = arith.constant 3.200000e+01 : f32
    %333 = vector.broadcast %cst_168 : f32 to vector<8x1xf32>
    %334 = arith.divf %332, %333 : vector<8x1xf32>
    %335 = vector.broadcast %334 : vector<8x1xf32> to vector<8x32xf32>
    %336 = arith.subf %330, %335 : vector<8x32xf32>
    %337 = arith.mulf %336, %336 : vector<8x32xf32>
    %cst_169 = arith.constant dense<0.000000e+00> : vector<8xf32>
    %338 = vector.multi_reduction <add>, %337, %cst_169 [1] : vector<8x32xf32> to vector<8xf32>
    %339 = vector.shape_cast %338 : vector<8xf32> to vector<8x1xf32>
    %cst_170 = arith.constant 3.200000e+01 : f32
    %340 = vector.broadcast %cst_170 : f32 to vector<8x1xf32>
    %341 = arith.divf %339, %340 : vector<8x1xf32>
    %342 = vector.broadcast %334 : vector<8x1xf32> to vector<8x32xf32>
    %343 = arith.subf %330, %342 : vector<8x32xf32>
    %cst_171 = arith.constant 9.99999974E-6 : f32
    %344 = vector.broadcast %cst_171 : f32 to vector<8x1xf32>
    %345 = arith.addf %341, %344 : vector<8x1xf32>
    %346 = math.rsqrt %345 : vector<8x1xf32>
    %347 = vector.broadcast %346 : vector<8x1xf32> to vector<8x32xf32>
    %348 = arith.mulf %343, %347 : vector<8x32xf32>
    %349 = vector.broadcast %2 : vector<1x32xf32> to vector<8x32xf32>
    %350 = arith.mulf %348, %349 : vector<8x32xf32>
    %351 = vector.broadcast %3 : vector<1x32xf32> to vector<8x32xf32>
    %352 = arith.addf %350, %351 : vector<8x32xf32>
    %c0_172 = arith.constant 0 : index
    %c0_173 = arith.constant 0 : index
    %353 = vector.load %arg6[%c0_172, %c0_173] : memref<32x32xf32, #tpu.memory_space<vmem>>, vector<32x32xf32>
    %cst_174 = arith.constant dense<0.000000e+00> : vector<8x32xf32>
    %354 = tpu.matmul %352, %353, %cst_174 {dimension_numbers = #tpu.dot_dimension_numbers<[1], [0], [0], [1], [0, 0, 1, 1], [], []>} : vector<8x32xf32>, vector<32x32xf32>, vector<8x32xf32> -> vector<8x32xf32>
    %355 = vector.broadcast %6 : vector<1x32xf32> to vector<8x32xf32>
    %356 = arith.addf %354, %355 : vector<8x32xf32>
    %cst_175 = arith.constant 0.176776692 : f32
    %357 = vector.broadcast %cst_175 : f32 to vector<8x32xf32>
    %358 = arith.mulf %356, %357 : vector<8x32xf32>
    %c0_176 = arith.constant 0 : index
    %c0_177 = arith.constant 0 : index
    %359 = vector.load %arg14[%c0_176, %c0_177] : memref<16x32xf32, #tpu.memory_space<vmem>>, vector<16x32xf32>
    %c0_178 = arith.constant 0 : index
    %c0_179 = arith.constant 0 : index
    %360 = vector.load %arg15[%c0_178, %c0_179] : memref<16x32xf32, #tpu.memory_space<vmem>>, vector<16x32xf32>
    %cst_180 = arith.constant dense<0.000000e+00> : vector<8x16xf32>
    %361 = tpu.matmul %358, %359, %cst_180 {dimension_numbers = #tpu.dot_dimension_numbers<[1], [1], [0], [0], [0, 0, 1, 0], [], []>} : vector<8x32xf32>, vector<16x32xf32>, vector<8x16xf32> -> vector<8x16xf32>
    %362 = tpu.iota {dimensions = array<i32: 0>} : vector<8x16xi32>
    %c4_i32_181 = arith.constant 4 : i32
    %363 = vector.broadcast %c4_i32_181 : i32 to vector<8x16xi32>
    %364 = arith.cmpi slt, %362, %363 : vector<8x16xi32>
    %cst_182 = arith.constant -1.000000e+30 : f32
    %365 = vector.broadcast %cst_182 : f32 to vector<8x16xf32>
    %366 = arith.select %364, %361, %365 : vector<8x16xi1>, vector<8x16xf32>
    %cst_183 = arith.constant dense<0xFF800000> : vector<16xf32>
    %367 = vector.multi_reduction <maximumf>, %366, %cst_183 [0] : vector<8x16xf32> to vector<16xf32>
    %368 = vector.shape_cast %367 : vector<16xf32> to vector<1x16xf32>
    %369 = vector.broadcast %368 : vector<1x16xf32> to vector<8x16xf32>
    %370 = arith.subf %366, %369 : vector<8x16xf32>
    %371 = math.exp %370 : vector<8x16xf32>
    %cst_184 = arith.constant dense<0.000000e+00> : vector<16xf32>
    %372 = vector.multi_reduction <add>, %371, %cst_184 [0] : vector<8x16xf32> to vector<16xf32>
    %373 = vector.shape_cast %372 : vector<16xf32> to vector<1x16xf32>
    %cst_185 = arith.constant 1.000000e+00 : f32
    %374 = vector.broadcast %cst_185 : f32 to vector<1x16xf32>
    %375 = arith.divf %374, %373 : vector<1x16xf32>
    %376 = vector.broadcast %375 : vector<1x16xf32> to vector<8x16xf32>
    %377 = arith.mulf %371, %376 : vector<8x16xf32>
    %cst_186 = arith.constant 9.99999993E-9 : f32
    %378 = vector.broadcast %cst_186 : f32 to vector<8x16xf32>
    %379 = arith.addf %377, %378 : vector<8x16xf32>
    %cst_187 = arith.constant dense<0.000000e+00> : vector<8xf32>
    %380 = vector.multi_reduction <add>, %379, %cst_187 [1] : vector<8x16xf32> to vector<8xf32>
    %381 = vector.shape_cast %380 : vector<8xf32> to vector<8x1xf32>
    %cst_188 = arith.constant 1.000000e+00 : f32
    %382 = vector.broadcast %cst_188 : f32 to vector<8x1xf32>
    %383 = arith.divf %382, %381 : vector<8x1xf32>
    %384 = vector.broadcast %383 : vector<8x1xf32> to vector<8x16xf32>
    %385 = arith.mulf %379, %384 : vector<8x16xf32>
    %cst_189 = arith.constant dense<0.000000e+00> : vector<8x32xf32>
    %386 = tpu.matmul %385, %360, %cst_189 {dimension_numbers = #tpu.dot_dimension_numbers<[1], [0], [0], [1], [0, 0, 1, 1], [], []>} : vector<8x16xf32>, vector<16x32xf32>, vector<8x32xf32> -> vector<8x32xf32>
    %c0_190 = arith.constant 0 : index
    %c0_191 = arith.constant 0 : index
    %c0_192 = arith.constant 0 : index
    %387 = vector.load %arg13[%c0_190, %c0_191, %c0_192] : memref<1x8x16xf32, #tpu.memory_space<vmem>>, vector<1x8x16xf32>
    %388 = vector.shape_cast %387 : vector<1x8x16xf32> to vector<8x16xf32>
    %389 = vector.shape_cast %379 : vector<8x16xf32> to vector<1x8x16xf32>
    tpu.vector_store %arg13[%c0_190, %c0_191, %c0_192], %389 {strides = array<i32>} : memref<1x8x16xf32, #tpu.memory_space<vmem>>, vector<1x8x16xf32>,
    %c0_193 = arith.constant 0 : index
    %c0_194 = arith.constant 0 : index
    %c0_195 = arith.constant 0 : index
    %390 = vector.load %arg8[%c0_193, %c0_194, %c0_195] : memref<3x32x32xf32, #tpu.memory_space<vmem>>, vector<1x32x32xf32>
    %391 = vector.shape_cast %390 : vector<1x32x32xf32> to vector<32x32xf32>
    %cst_196 = arith.constant dense<0.000000e+00> : vector<8x32xf32>
    %392 = tpu.matmul %386, %391, %cst_196 {dimension_numbers = #tpu.dot_dimension_numbers<[1], [0], [0], [1], [0, 0, 1, 1], [], []>} : vector<8x32xf32>, vector<32x32xf32>, vector<8x32xf32> -> vector<8x32xf32>
    %393 = vector.broadcast %9 : vector<1x32xf32> to vector<8x32xf32>
    %394 = arith.addf %392, %393 : vector<8x32xf32>
    %c0_197 = arith.constant 0 : index
    %c0_198 = arith.constant 0 : index
    %c0_199 = arith.constant 0 : index
    %395 = vector.load %arg9[%c0_197, %c0_198, %c0_199] : memref<3x32x32xf32, #tpu.memory_space<vmem>>, vector<1x32x32xf32>
    %396 = vector.shape_cast %395 : vector<1x32x32xf32> to vector<32x32xf32>
    %cst_200 = arith.constant dense<0.000000e+00> : vector<8x32xf32>
    %397 = tpu.matmul %330, %396, %cst_200 {dimension_numbers = #tpu.dot_dimension_numbers<[1], [0], [0], [1], [0, 0, 1, 1], [], []>} : vector<8x32xf32>, vector<32x32xf32>, vector<8x32xf32> -> vector<8x32xf32>
    %398 = arith.addf %394, %397 : vector<8x32xf32>
    %399 = vector.broadcast %12 : vector<1x32xf32> to vector<8x32xf32>
    %400 = arith.addf %398, %399 : vector<8x32xf32>
    %401 = arith.negf %400 : vector<8x32xf32>
    %402 = math.exp %401 : vector<8x32xf32>
    %cst_201 = arith.constant 1.000000e+00 : f32
    %403 = vector.broadcast %cst_201 : f32 to vector<8x32xf32>
    %404 = arith.addf %403, %402 : vector<8x32xf32>
    %405 = arith.divf %403, %404 : vector<8x32xf32>
    %c1_202 = arith.constant 1 : index
    %c0_203 = arith.constant 0 : index
    %c0_204 = arith.constant 0 : index
    %406 = vector.load %arg8[%c1_202, %c0_203, %c0_204] : memref<3x32x32xf32, #tpu.memory_space<vmem>>, vector<1x32x32xf32>
    %407 = vector.shape_cast %406 : vector<1x32x32xf32> to vector<32x32xf32>
    %cst_205 = arith.constant dense<0.000000e+00> : vector<8x32xf32>
    %408 = tpu.matmul %386, %407, %cst_205 {dimension_numbers = #tpu.dot_dimension_numbers<[1], [0], [0], [1], [0, 0, 1, 1], [], []>} : vector<8x32xf32>, vector<32x32xf32>, vector<8x32xf32> -> vector<8x32xf32>
    %409 = vector.broadcast %10 : vector<1x32xf32> to vector<8x32xf32>
    %410 = arith.addf %408, %409 : vector<8x32xf32>
    %c1_206 = arith.constant 1 : index
    %c0_207 = arith.constant 0 : index
    %c0_208 = arith.constant 0 : index
    %411 = vector.load %arg9[%c1_206, %c0_207, %c0_208] : memref<3x32x32xf32, #tpu.memory_space<vmem>>, vector<1x32x32xf32>
    %412 = vector.shape_cast %411 : vector<1x32x32xf32> to vector<32x32xf32>
    %cst_209 = arith.constant dense<0.000000e+00> : vector<8x32xf32>
    %413 = tpu.matmul %330, %412, %cst_209 {dimension_numbers = #tpu.dot_dimension_numbers<[1], [0], [0], [1], [0, 0, 1, 1], [], []>} : vector<8x32xf32>, vector<32x32xf32>, vector<8x32xf32> -> vector<8x32xf32>
    %414 = arith.addf %410, %413 : vector<8x32xf32>
    %415 = vector.broadcast %13 : vector<1x32xf32> to vector<8x32xf32>
    %416 = arith.addf %414, %415 : vector<8x32xf32>
    %417 = arith.negf %416 : vector<8x32xf32>
    %418 = math.exp %417 : vector<8x32xf32>
    %cst_210 = arith.constant 1.000000e+00 : f32
    %419 = vector.broadcast %cst_210 : f32 to vector<8x32xf32>
    %420 = arith.addf %419, %418 : vector<8x32xf32>
    %421 = arith.divf %419, %420 : vector<8x32xf32>
    %c2_211 = arith.constant 2 : index
    %c0_212 = arith.constant 0 : index
    %c0_213 = arith.constant 0 : index
    %422 = vector.load %arg8[%c2_211, %c0_212, %c0_213] : memref<3x32x32xf32, #tpu.memory_space<vmem>>, vector<1x32x32xf32>
    %423 = vector.shape_cast %422 : vector<1x32x32xf32> to vector<32x32xf32>
    %cst_214 = arith.constant dense<0.000000e+00> : vector<8x32xf32>
    %424 = tpu.matmul %386, %423, %cst_214 {dimension_numbers = #tpu.dot_dimension_numbers<[1], [0], [0], [1], [0, 0, 1, 1], [], []>} : vector<8x32xf32>, vector<32x32xf32>, vector<8x32xf32> -> vector<8x32xf32>
    %425 = vector.broadcast %11 : vector<1x32xf32> to vector<8x32xf32>
    %426 = arith.addf %424, %425 : vector<8x32xf32>
    %c2_215 = arith.constant 2 : index
    %c0_216 = arith.constant 0 : index
    %c0_217 = arith.constant 0 : index
    %427 = vector.load %arg9[%c2_215, %c0_216, %c0_217] : memref<3x32x32xf32, #tpu.memory_space<vmem>>, vector<1x32x32xf32>
    %428 = vector.shape_cast %427 : vector<1x32x32xf32> to vector<32x32xf32>
    %cst_218 = arith.constant dense<0.000000e+00> : vector<8x32xf32>
    %429 = tpu.matmul %330, %428, %cst_218 {dimension_numbers = #tpu.dot_dimension_numbers<[1], [0], [0], [1], [0, 0, 1, 1], [], []>} : vector<8x32xf32>, vector<32x32xf32>, vector<8x32xf32> -> vector<8x32xf32>
    %430 = vector.broadcast %14 : vector<1x32xf32> to vector<8x32xf32>
    %431 = arith.addf %429, %430 : vector<8x32xf32>
    %432 = arith.mulf %405, %431 : vector<8x32xf32>
    %433 = arith.addf %426, %432 : vector<8x32xf32>
    %434 = math.tanh %433 : vector<8x32xf32>
    %cst_219 = arith.constant 1.000000e+00 : f32
    %435 = vector.broadcast %cst_219 : f32 to vector<8x32xf32>
    %436 = arith.subf %435, %421 : vector<8x32xf32>
    %437 = arith.mulf %436, %434 : vector<8x32xf32>
    %438 = arith.mulf %421, %330 : vector<8x32xf32>
    %439 = arith.addf %437, %438 : vector<8x32xf32>
    %cst_220 = arith.constant dense<0.000000e+00> : vector<8xf32>
    %440 = vector.multi_reduction <add>, %439, %cst_220 [1] : vector<8x32xf32> to vector<8xf32>
    %441 = vector.shape_cast %440 : vector<8xf32> to vector<8x1xf32>
    %cst_221 = arith.constant 3.200000e+01 : f32
    %442 = vector.broadcast %cst_221 : f32 to vector<8x1xf32>
    %443 = arith.divf %441, %442 : vector<8x1xf32>
    %444 = vector.broadcast %443 : vector<8x1xf32> to vector<8x32xf32>
    %445 = arith.subf %439, %444 : vector<8x32xf32>
    %446 = arith.mulf %445, %445 : vector<8x32xf32>
    %cst_222 = arith.constant dense<0.000000e+00> : vector<8xf32>
    %447 = vector.multi_reduction <add>, %446, %cst_222 [1] : vector<8x32xf32> to vector<8xf32>
    %448 = vector.shape_cast %447 : vector<8xf32> to vector<8x1xf32>
    %cst_223 = arith.constant 3.200000e+01 : f32
    %449 = vector.broadcast %cst_223 : f32 to vector<8x1xf32>
    %450 = arith.divf %448, %449 : vector<8x1xf32>
    %451 = vector.broadcast %443 : vector<8x1xf32> to vector<8x32xf32>
    %452 = arith.subf %439, %451 : vector<8x32xf32>
    %cst_224 = arith.constant 9.99999974E-6 : f32
    %453 = vector.broadcast %cst_224 : f32 to vector<8x1xf32>
    %454 = arith.addf %450, %453 : vector<8x1xf32>
    %455 = math.rsqrt %454 : vector<8x1xf32>
    %456 = vector.broadcast %455 : vector<8x1xf32> to vector<8x32xf32>
    %457 = arith.mulf %452, %456 : vector<8x32xf32>
    %458 = vector.broadcast %4 : vector<1x32xf32> to vector<8x32xf32>
    %459 = arith.mulf %457, %458 : vector<8x32xf32>
    %460 = vector.broadcast %5 : vector<1x32xf32> to vector<8x32xf32>
    %461 = arith.addf %459, %460 : vector<8x32xf32>
    %c0_225 = arith.constant 0 : index
    %c0_226 = arith.constant 0 : index
    %462 = vector.load %arg10[%c0_225, %c0_226] : memref<32x64xf32, #tpu.memory_space<vmem>>, vector<32x64xf32>
    %cst_227 = arith.constant dense<0.000000e+00> : vector<8x64xf32>
    %463 = tpu.matmul %461, %462, %cst_227 {dimension_numbers = #tpu.dot_dimension_numbers<[1], [0], [0], [1], [0, 0, 1, 1], [], []>} : vector<8x32xf32>, vector<32x64xf32>, vector<8x64xf32> -> vector<8x64xf32>
    %464 = vector.broadcast %16 : vector<1x64xf32> to vector<8x64xf32>
    %465 = arith.addf %463, %464 : vector<8x64xf32>
    %cst_228 = arith.constant 0.000000e+00 : f32
    %466 = vector.broadcast %cst_228 : f32 to vector<8x64xf32>
    %467 = arith.maximumf %465, %466 : vector<8x64xf32>
    %c0_229 = arith.constant 0 : index
    %c0_230 = arith.constant 0 : index
    %468 = vector.load %arg11[%c0_229, %c0_230] : memref<64x32xf32, #tpu.memory_space<vmem>>, vector<64x32xf32>
    %cst_231 = arith.constant dense<0.000000e+00> : vector<8x32xf32>
    %469 = tpu.matmul %467, %468, %cst_231 {dimension_numbers = #tpu.dot_dimension_numbers<[1], [0], [0], [1], [0, 0, 1, 1], [], []>} : vector<8x64xf32>, vector<64x32xf32>, vector<8x32xf32> -> vector<8x32xf32>
    %470 = arith.addf %439, %469 : vector<8x32xf32>
    %471 = vector.broadcast %15 : vector<1x32xf32> to vector<8x32xf32>
    %472 = arith.addf %470, %471 : vector<8x32xf32>
    %c0_232 = arith.constant 0 : index
    %c0_233 = arith.constant 0 : index
    %473 = vector.load %arg12[%c0_232, %c0_233] : memref<8x32xf32, #tpu.memory_space<vmem>>, vector<8x32xf32>
    tpu.vector_store %arg12[%c0_232, %c0_233], %472 {strides = array<i32>} : memref<8x32xf32, #tpu.memory_space<vmem>>, vector<8x32xf32>,
    return
  }
  func.func @transform_0(%arg0: i32) -> (i32, i32) {
    %c0_i32 = arith.constant 0 : i32
    %c0_i32_0 = arith.constant 0 : i32
    return %arg0, %c0_i32 : i32, i32
  }
  func.func @transform_1(%arg0: i32) -> (i32, i32) {
    %c0_i32 = arith.constant 0 : i32
    %c0_i32_0 = arith.constant 0 : i32
    return %arg0, %c0_i32 : i32, i32
  }
  func.func @transform_2(%arg0: i32) -> (i32, i32) {
    %c0_i32 = arith.constant 0 : i32
    %c0_i32_0 = arith.constant 0 : i32
    %c0_i32_1 = arith.constant 0 : i32
    return %c0_i32, %c0_i32_0 : i32, i32
  }
  func.func @transform_3(%arg0: i32) -> (i32, i32) {
    %c0_i32 = arith.constant 0 : i32
    %c0_i32_0 = arith.constant 0 : i32
    %c0_i32_1 = arith.constant 0 : i32
    return %c0_i32, %c0_i32_0 : i32, i32
  }
  func.func @transform_4(%arg0: i32) -> (i32, i32) {
    %c0_i32 = arith.constant 0 : i32
    %c0_i32_0 = arith.constant 0 : i32
    %c0_i32_1 = arith.constant 0 : i32
    return %c0_i32, %c0_i32_0 : i32, i32
  }
  func.func @transform_5(%arg0: i32) -> (i32, i32) {
    %c0_i32 = arith.constant 0 : i32
    %c0_i32_0 = arith.constant 0 : i32
    %c0_i32_1 = arith.constant 0 : i32
    return %c0_i32, %c0_i32_0 : i32, i32
  }
  func.func @transform_6(%arg0: i32) -> (i32, i32, i32) {
    %c0_i32 = arith.constant 0 : i32
    %c0_i32_0 = arith.constant 0 : i32
    %c0_i32_1 = arith.constant 0 : i32
    %c0_i32_2 = arith.constant 0 : i32
    return %c0_i32, %c0_i32_0, %c0_i32_1 : i32, i32, i32
  }
  func.func @transform_7(%arg0: i32) -> (i32, i32, i32) {
    %c0_i32 = arith.constant 0 : i32
    %c0_i32_0 = arith.constant 0 : i32
    %c0_i32_1 = arith.constant 0 : i32
    %c0_i32_2 = arith.constant 0 : i32
    return %c0_i32, %c0_i32_0, %c0_i32_1 : i32, i32, i32
  }
  func.func @transform_8(%arg0: i32) -> (i32, i32, i32) {
    %c0_i32 = arith.constant 0 : i32
    %c0_i32_0 = arith.constant 0 : i32
    %c0_i32_1 = arith.constant 0 : i32
    %c0_i32_2 = arith.constant 0 : i32
    return %c0_i32, %c0_i32_0, %c0_i32_1 : i32, i32, i32
  }
  func.func @transform_9(%arg0: i32) -> (i32, i32) {
    %c0_i32 = arith.constant 0 : i32
    %c0_i32_0 = arith.constant 0 : i32
    %c0_i32_1 = arith.constant 0 : i32
    return %c0_i32, %c0_i32_0 : i32, i32
  }
  func.func @transform_10(%arg0: i32) -> (i32, i32) {
    %c0_i32 = arith.constant 0 : i32
    %c0_i32_0 = arith.constant 0 : i32
    %c0_i32_1 = arith.constant 0 : i32
    return %c0_i32, %c0_i32_0 : i32, i32
  }
  func.func @transform_11(%arg0: i32) -> (i32, i32) {
    %c0_i32 = arith.constant 0 : i32
    %c0_i32_0 = arith.constant 0 : i32
    return %arg0, %c0_i32 : i32, i32
  }
  func.func @transform_12(%arg0: i32) -> (i32, i32, i32) {
    %c0_i32 = arith.constant 0 : i32
    %c0_i32_0 = arith.constant 0 : i32
    %c0_i32_1 = arith.constant 0 : i32
    return %arg0, %c0_i32, %c0_i32_0 : i32, i32, i32
  }
}

</mosaic_0001>

<bundles_post_ra>
// kernel: slot_attention.1
= control target key start
LH: loop header
LB: loop body
LE: loop exit
PB: predicated region body
PF: predicated region fallthrough
CT: control target
= control target key end

     0   :  { %s4390_s21 = smov 0   ;;  %s5264_s0 = inlined_call_operand.vmem [shape: f32[32,32], index: 0, kind: input, shape index: {}]   ;;  %s5265_s1 = inlined_call_operand.vmem [shape: f32[16,32], index: 1, kind: input, shape index: {}]   ;;  %s5266_s2 = inlined_call_operand.vmem [shape: f32[6,32], index: 2, kind: input, shape index: {}]   ;;  %s5267_s3 = inlined_call_operand.vmem [shape: f32[10,32], index: 3, kind: input, shape index: {}]   ;;  %s5268_s4 = inlined_call_operand.vmem [shape: f32[1,64], index: 4, kind: input, shape index: {}]   ;;  %s5269_s5 = inlined_call_operand.vmem [shape: f32[32,32], index: 5, kind: input, shape index: {}]   ;;  %s5270_s6 = inlined_call_operand.vmem [shape: f32[2,32,32], index: 6, kind: input, shape index: {}]   ;;  %s5271_s7 = inlined_call_operand.vmem [shape: f32[3,32,32], index: 7, kind: input, shape index: {}]   ;;  %s5272_s8 = inlined_call_operand.vmem [shape: f32[3,32,32], index: 8, kind: input, shape index: {}]   ;;  %s5273_s9 = inlined_call_operand.vmem [shape: f32[32,64], index: 9, kind: input, shape index: {}]   ;;  %s5274_s10 = inlined_call_operand.vmem [shape: f32[64,32], index: 10, kind: input, shape index: {}]   ;;  %s5275_s11 = inlined_call_operand.vmem [shape: f32[16,32], index: 11, kind: output, shape index: {0}]   ;;  %s5276_s12 = inlined_call_operand.vmem [shape: f32[2,8,16], index: 12, kind: output, shape index: {1}]  }
   0x1 LB: > { %s3554_s22 = sadd.s32 4294967295, %s4321_s21   ;;  %p3558_p0 = scmp.ge.s32.totalorder %s4321_s21, 1  ;;  %s4321_s21 = sphi %s4390_s21, %s23_s21  }
   0x2   : > { %p375_p1 = scmp.lt.s32.totalorder %s4321_s21, 3 }
   0x4   : > { %p376_p2 = pnand %p3558_p0, %p375_p1 }
   0x6   : > { %379 = sbr.rel (%p376_p2) target bundleno = 6229 (0x1855), region = 64 }
   0xb   : > { %s3559_s23 = sshll.u32 %s3554_s22, 1  ;;  %p430_p3 = scmp.lt.s32.totalorder %s3554_s22, 1  ;;  %vm461_vm0 = vcmask 261120   ;;  %v504_v21 = vld [vmem:[%s5270_s6 + $0x18] sm:$0xff]  ;;  %v503_v22 = vld [vmem:[%s5270_s6 + $0x10] sm:$0xff]  ;;  %v5277_v24 = vmov 0.0  }
   0xc   : > { %p425_p4 = scmp.lt.s32.totalorder %s3559_s23, 3  ;;  %v4430_v23 = vld [vmem:[%s5269_s5 + $0x18] sm:$0xff]  ;;  %3845 = vmatprep.subr.mxu1 %v504_v21  ;;  %3867 = vmatprep.subr.mxu0 %v5277_v24  ;;  %v4436_v25 = vld [vmem:[%s5269_s5 + $0x10] sm:$0xff]  ;;  %v502_v26 = vld [vmem:[%s5270_s6 + $0x8] sm:$0xff]  ;;  %vm4324_vm1 = vmmov 0   ;;  %vm871_vm3 = vcmask 130048  }
   0xd   : > { %s5307_s22 = smov (!%p430_p3, %s3554_s22), 1  ;;  %3846 = vmatpush3.msra.mxu1 %v504_v21  ;;  %3868 = vmatpush3.msra.mxu0 %v4430_v23  ;;  %v501_v27 = vld [vmem:[%s5270_s6] sm:$0xff]  ;;  %v4451_v28 = vld [vmem:[%s5269_s5 + $0x8] sm:$0xff]  ;;  %v3572_v29 = vld [vmem:[%s5270_s6 + $0x38] sm:$0xff]  ;;  %vm1588_vm4 = vcmask 523264  }
   0xe   : > { %s5309_s23 = smov (!%p425_p4, %s3559_s23), 3  ;;  %s4398_s24 = sshll.u32 %s5307_s22, 3  ;;  %3847 = vmatprep.subr.mxu1 %v503_v22  ;;  %3869 = vmatprep.subr.mxu0 %v5277_v24  ;;  %v4461_v30 = vld [vmem:[%s5269_s5] sm:$0xff]  ;;  %v3571_v56 = vld [vmem:[%s5270_s6 + $0x30] sm:$0xff]  ;;  %v3570_v57 = vld [vmem:[%s5270_s6 + $0x28] sm:$0xff] }
   0xf   : > { %s3560_s25 = sshll.u32 %s5309_s23, 3  ;;  %s433_s28 = scalar_lea.vmem %s5265_s1, %s4398_s24  ;;  %3848 = vmatpush3.msra.mxu1 %v503_v22  ;;  %3870 = vmatpush3.msra.mxu0 %v4436_v25  ;;  %v3564_v41 = vld [vmem:[%s5266_s2] ss:$0 sm:$0xff]  ;;  %v3565_v43 = vld [vmem:[%s5266_s2 + $0x1] ss:$0 sm:$0xff] }
  0x10   : > { %s428_s13 = scalar_lea.vmem %s5264_s0, %s3560_s25  ;;  %v4407_v0 = vld [vmem:[%s433_s28] sm:$0xff]  ;;  %3849 = vmatprep.subr.mxu1 %v502_v26  ;;  %3871 = vmatprep.subr.mxu0 %v5277_v24  ;;  %s441_s16 = scalar_lea.vmem %s5276_s12, %s4398_s24 }
  0x11   : > { %v459_v1 = vld [vmem:[%s428_s13] sm:$0xff]  ;;  %v679_v2 = vsel %vm461_vm0, %v4407_v0, 0.0  ;;  %v460_v3 = vld [vmem:[%s428_s13 + $0x8] sm:$0xff]  ;;  %3850 = vmatpush3.msra.mxu1 %v502_v26  ;;  %3872 = vmatpush3.msra.mxu0 %v4451_v28  ;;  %s437_s25 = scalar_lea.vmem %s5275_s11, %s4398_s24 }
  0x12   : > { %v462_v4 = vsel %vm461_vm0, %v459_v1, 0.0  ;;  %680 = vadd.xlane.f32.xlu1 %v679_v2  ;;  %v465_v5 = vsel %vm461_vm0, %v460_v3, 0.0  ;;  %3851 = vmatprep.subr.mxu1 %v501_v27  ;;  %v4476_v46 = vld [vmem:[%s5266_s2 + $0x2] ss:$0 sm:$0xff]  ;;  %v4482_v51 = vld [vmem:[%s5266_s2 + $0x3] ss:$0 sm:$0xff] }
  0x13   : > { %463 = vadd.xlane.f32.xlu0 %v462_v4  ;;  %3852 = vmatpush3.msra.mxu1 %v501_v27  ;;  %v3569_v58 = vld [vmem:[%s5270_s6 + $0x20] sm:$0xff] }
  0x14   : > { %3873 = vmatprep.subr.mxu0 %v5277_v24  ;;  %3856 = vmatprep.subr.mxu1 %v3572_v29  ;;  %v3566_v59 = vld [vmem:[%s5267_s3 + $0x1] ss:$0 sm:$0xff] }
  0x15   : > { %3874 = vmatpush3.msra.mxu0 %v4461_v30  ;;  %3875 = vmatprep.mubr.msk.f32.mxu0 %vm4324_vm1, %v5277_v24 }
  0x16   : > { %3885 = vmatprep.subr.mxu0 %v5277_v24 }
  0x17   : > { %466 = vadd.xlane.f32.xlu0 %v465_v5  ;;  %v4516_v5 = vld [vmem:[%s5267_s3] ss:$0 sm:$0xff] }
  0x9b   : > { %v681_v6 = vpop.xlane.xlu1 %680 }
  0x9c   : > { %v464_v7 = vpop.xlane.xlu0 %463  ;;  %v682_v8 = vmul.f32 0.03125, %v681_v6 }
  0x9d   : > { %v469_v9 = vmul.f32 0.03125, %v464_v7 }
  0x9e   : > { %v4414_v10 = vsub.f32 %v4407_v0, %v682_v8 }
  0x9f   : > { %v471_v11 = vsub.f32 %v459_v1, %v469_v9 }
  0xa0   : > { %v467_v12 = vpop.xlane.xlu0 %466  ;;  %v684_v15 = vmul.f32 %v4414_v10, %v4414_v10 }
  0xa1   : > { %v470_v13 = vmul.f32 0.03125, %v467_v12  ;;  %v473_v14 = vmul.f32 %v471_v11, %v471_v11 }
  0xa2   : > { %v685_v18 = vsel %vm461_vm0, %v684_v15, 0.0  ;;  %v867_v15 = vlaneseq }
  0xa3   : > { %v472_v16 = vsub.f32 %v460_v3, %v470_v13  ;;  %v475_v17 = vsel %vm461_vm0, %v473_v14, 0.0  ;;  %v3573_v3 = vld [vmem:[%s5267_s3 + $0x2] ss:$0 sm:$0xff] }
  0xa4   : > { %476 = vadd.xlane.f32.xlu1 %v475_v17 }
  0xa5   : > { %v474_v19 = vmul.f32 %v472_v16, %v472_v16 }
  0xa7   : > { %v478_v20 = vsel %vm461_vm0, %v474_v19, 0.0 }
  0xa8   : > { %686 = vadd.xlane.f32.xlu1 %v685_v18  ;;  %479 = vadd.xlane.f32.xlu0 %v478_v20 }
 0x12d   : > { %v477_v31 = vpop.xlane.xlu1 %476 }
 0x12e   : > { %v481_v32 = vmul.f32 0.03125, %v477_v31 }
 0x130   : > { %v483_v33 = vadd.f32 1e-05, %v481_v32 }
 0x131   : > { %v687_v34 = vpop.xlane.xlu1 %686  ;;  %v480_v35 = vpop.xlane.xlu0 %479 }
 0x132   : > { %4240 = vrsqrt.f32 %v483_v33  ;;  %v688_v36 = vmul.f32 0.03125, %v687_v34  ;;  %v482_v37 = vmul.f32 0.03125, %v480_v35 }
 0x134   : > { %v689_v38 = vadd.f32 1e-05, %v688_v36  ;;  %v484_v39 = vadd.f32 1e-05, %v482_v37 }
 0x136   : > { %4242 = vrsqrt.f32 %v689_v38 }
 0x137   : > { %4244 = vrsqrt.f32 %v484_v39 }
 0x13f   : > { %v4241_v40 = vpop.eup %4240 }
 0x140   : > { %v487_v42 = vmul.f32 %v4241_v40, %v471_v11 }
 0x142   : > { %v493_v44 = vmul.f32 %v3564_v41, %v487_v42 }
 0x143   : > { %v4243_v45 = vpop.eup %4242 }
 0x144   : > { %v4245_v47 = vpop.eup %4244  ;;  %v499_v48 = vadd.f32 %v3565_v43, %v493_v44  ;;  %v691_v49 = vmul.f32 %v4243_v45, %v4414_v10 }
 0x145   : > { %v488_v50 = vmul.f32 %v4245_v47, %v472_v16  ;;  %v4542_v16 = vshrl.u32 %v867_v15, 7  ;;  %v4553_v47 = vld [vmem:[%s5271_s7 + $0x18] sm:$0xff] }
 0x146   : > { %3853 = vmatprep.mubr.msk.f32.mxu1 %vm461_vm0, %v499_v48  ;;  %v696_v52 = vmul.f32 %v4476_v46, %v691_v49  ;;  %v4566_v49 = vld [vmem:[%s5271_s7 + $0x8] sm:$0xff]  ;;  %v4709_v15 = vld [vmem:[%s5271_s7 + $0x58] sm:$0xff] }
 0x147   : > { %v494_v53 = vmul.f32 %v3564_v41, %v488_v50  ;;  %5291 = vst [vmem:[#allocation6_spill] sm:$0xff] %v4542_v16  ;;  %vm869_vm2 = vcmp.lt.s32.totalorder %v4542_v16, 4  ;;  %v4573_v50 = vld [vmem:[%s5271_s7] sm:$0xff] }
 0x148   : > { %v701_v54 = vadd.f32 %v4482_v51, %v696_v52 }
 0x149   : > { %v500_v55 = vadd.f32 %v3565_v43, %v494_v53 }
 0x14a   : > { %3876 = vmatmul.mubr.msk.f32.vlgmr.msra.gmra.mxu0 %vm461_vm0, %v701_v54 }
 0x14b   : > { %3854 = vmatmul.mubr.msk.f32.vlgmr.msra.gmra.mxu1 %vm461_vm0, %v500_v55  ;;  %3889 = vmatprep.mubr.msk.f32.mxu0 %vm4324_vm1, %v5277_v24 }
 0x14c   : > { %3857 = vmatpush3.msra.mxu1 %v3572_v29  ;;  %3864 = vmatprep.mubr.msk.f32.mxu1 %vm461_vm0, %v499_v48  ;;  %v4559_v48 = vld [vmem:[%s5271_s7 + $0x10] sm:$0xff] }
 0x14d   : > { %3858 = vmatprep.subr.mxu1 %v3571_v56 }
 0x14e   : > { %3859 = vmatpush3.msra.mxu1 %v3571_v56  ;;  %v4587_v56 = vld [vmem:[%s5272_s8 + $0x10] sm:$0xff] }
 0x14f   : > { %3860 = vmatprep.subr.mxu1 %v3570_v57 }
 0x150   : > { %3861 = vmatpush3.msra.mxu1 %v3570_v57  ;;  %v4596_v57 = vld [vmem:[%s5272_s8 + $0x8] sm:$0xff] }
 0x151   : > { %3862 = vmatprep.subr.mxu1 %v3569_v58 }
 0x152   : > { %3863 = vmatpush3.msra.mxu1 %v3569_v58  ;;  %v4605_v58 = vld [vmem:[%s5272_s8] sm:$0xff] }
 0x153   : > { %3865 = vmatmul.mubr.msk.f32.vlgmr.msra.gmra.mxu1 %vm461_vm0, %v500_v55  ;;  %3878 = vmatprep.subr.mxu1 %v5277_v24  ;;  %v4581_v55 = vld [vmem:[%s5272_s8 + $0x18] sm:$0xff] }
 0x154   : > { %3882 = vmatprep.mubr.msk.f32.mxu1 %vm4324_vm1, %v5277_v24 }
 0x20a   : > { %v779_v60 = vpop.f32.mrf.mxu0 }
 0x20b   : > { %v3855_v61 = vpop.f32.mrf.mxu1  ;;  %v780_v10 = vadd.f32 %v4516_v5, %v779_v60  ;;  %v4623_v60 = vld [vmem:[%s5272_s8 + $0x30] sm:$0xff] }
 0x20c   : > { %v587_v62 = vadd.f32 %v3855_v61, %v3566_v59  ;;  %v3877_v63 = vpop.f32.mrf.mxu0  ;;  %v4630_v61 = vld [vmem:[%s5272_s8 + $0x28] sm:$0xff] }
 0x20d   : > { %v581_v1 = vpop.f32.mrf.mxu1  ;;  %v783_v12 = vmul.f32 0.17677669, %v780_v10  ;;  %v4648_v63 = vld [vmem:[%s5272_s8 + $0x58] sm:$0xff]  ;;  %v4695_v10 = vld [vmem:[%s5271_s7 + $0x28] sm:$0xff] }
 0x20e   : > { %591 = vst.msk [vmem:[#allocation2 + $0x8] sm:$0xff] %vm461_vm0, %v587_v62  ;;  %v582_v2 = vadd.f32 %v3566_v59, %v581_v1  ;;  %v4614_v59 = vld [vmem:[%s5272_s8 + $0x38] sm:$0xff]  ;;  %v4637_v62 = vld [vmem:[%s5272_s8 + $0x20] sm:$0xff]  ;;  %v4653_v1 = vld [vmem:[%s5272_s8 + $0x50] sm:$0xff] }
 0x210   : > { %590 = vst.msk [vmem:[#allocation2] sm:$0xff] %vm461_vm0, %v582_v2  ;;  %v4660_v2 = vld [vmem:[%s5272_s8 + $0x48] sm:$0xff] }
 0x213   : > { %v3866_v4 = vpop.f32.mrf.mxu1 }
 0x214   : > { %v673_v6 = vadd.f32 %v3866_v4, %v3573_v3  ;;  %v4680_v4 = vld [vmem:[%s5271_s7 + $0x38] sm:$0xff] }
 0x215   : > { %v667_v7 = vpop.f32.mrf.mxu1  ;;  %v4518_v8 = vld [vmem:[#allocation2 + $0x8] sm:$0xff] }
 0x216   : > { %677 = vst.msk [vmem:[#allocation3 + $0x8] sm:$0xff] %vm461_vm0, %v673_v6  ;;  %v668_v9 = vadd.f32 %v3573_v3, %v667_v7  ;;  %3879 = vmatpush3.xpose.msk.msra.mxu1 %vm461_vm0, %v4518_v8  ;;  %v4667_v3 = vld [vmem:[%s5272_s8 + $0x40] sm:$0xff]  ;;  %v4686_v7 = vld [vmem:[%s5271_s7 + $0x30] sm:$0xff] }
 0x217   : > { %3880 = vmatprep.subr.mxu1 %v5277_v24  ;;  %v4526_v11 = vld [vmem:[#allocation2] sm:$0xff] }
 0x218   : > { %676 = vst.msk [vmem:[#allocation3] sm:$0xff] %vm461_vm0, %v668_v9 }
 0x21a   : > { %3881 = vmatpush3.xpose.msk.msra.mxu1 %vm461_vm0, %v4526_v11 }
 0x21b   : > { %3892 = vmatprep.subr.mxu1 %v5277_v24 }
 0x21d   : > { %3883 = vmatmul.mubr.msk.f32.vlgmr.msra.gmra.mxu1 %vm461_vm0, %v783_v12  ;;  %v4532_v13 = vld [vmem:[#allocation3 + $0x8] sm:$0xff]  ;;  %v4702_v12 = vld [vmem:[%s5271_s7 + $0x20] sm:$0xff] }
 0x21e   : > { %5289 = vst [vmem:[#allocation4_spill] sm:$0xff] %v4532_v13  ;;  %3886 = vmatpush3.msra.mxu0 %v4532_v13  ;;  %3900 = vmatprep.mubr.msk.f32.mxu1 %vm4324_vm1, %v5277_v24 }
 0x21f   : > { %3887 = vmatprep.subr.mxu0 %v5277_v24  ;;  %v4538_v14 = vld [vmem:[#allocation3] sm:$0xff]  ;;  %3893 = vmatpush3.msra.mxu1 %v4553_v47 }
 0x220   : > { %5290 = vst [vmem:[#allocation5_spill] sm:$0xff] %v4538_v14  ;;  %3888 = vmatpush3.msra.mxu0 %v4538_v14  ;;  %3894 = vmatprep.subr.mxu1 %v5277_v24 }
 0x221   : > { %3903 = vmatprep.subr.mxu0 %v5277_v24  ;;  %3895 = vmatpush3.msra.mxu1 %v4559_v48 }
 0x222   : > { %3896 = vmatprep.subr.mxu1 %v5277_v24 }
 0x223   : > { %3897 = vmatpush3.msra.mxu1 %v4566_v49 }
 0x224   : > { %3898 = vmatprep.subr.mxu1 %v5277_v24 }
 0x225   : > { %3899 = vmatpush3.msra.mxu1 %v4573_v50 }
 0x226   : > { %3914 = vmatprep.subr.mxu1 %v5277_v24 }
 0x2dd   : > { %v863_v17 = vpop.f32.mrf.mxu1 }
 0x2de   : > { %v870_v18 = vsel %vm869_vm2, %v863_v17, -1e+30  ;;  %v4717_v17 = vld [vmem:[%s5271_s7 + $0x50] sm:$0xff] }
 0x2df   : > { %v872_v19 = vsel %vm871_vm3, %v870_v18, -inf  ;;  %v3884_v20 = vpop.f32.mrf.mxu1 }
 0x2e0   : > { %v873_v21 = vrot.slane %v872_v19, 4 }
 0x2e2   : > { %v874_v22 = vmax.f32 %v872_v19, %v873_v21  ;;  %v4733_v19 = vld [vmem:[%s5271_s7 + $0x40] sm:$0xff] }
 0x2e4   : > { %v875_v26 = vrot.slane %v874_v22, 2 }
 0x2e6   : > { %v876_v27 = vmax.f32 %v874_v22, %v875_v26 }
 0x2e8   : > { %v877_v29 = vrot.slane %v876_v27, 1 }
 0x2ea   : > { %v878_v31 = vmax.f32 %v876_v27, %v877_v29 }
 0x2ec   : > { %v879_v32 = vsub.f32 %v870_v18, %v878_v31  ;;  %v4726_v18 = vld [vmem:[%s5271_s7 + $0x48] sm:$0xff]  ;;  %v4745_v31 = vld [vmem:[%s5267_s3 + $0x3] ss:$0 sm:$0xff] }
 0x2ee   : > { %v880_v33 = vmul.f32 1.442695, %v879_v32 }
 0x2f0   : > { %4246 = vpow2.f32 %v880_v33 }
 0x2fd   : > { %v4247_v34 = vpop.eup %4246 }
 0x2fe   : > { %v882_v35 = vsel %vm871_vm3, %v4247_v34, 0.0 }
 0x2ff   : > { %v883_v36 = vrot.slane %v882_v35, 4 }
 0x301   : > { %v884_v37 = vadd.f32 %v883_v36, %v882_v35 }
 0x303   : > { %v885_v38 = vrot.slane %v884_v37, 2 }
 0x305   : > { %v886_v39 = vadd.f32 %v885_v38, %v884_v37  ;;  %v4757_v38 = vld [vmem:[%s5267_s3 + $0x4] ss:$0 sm:$0xff] }
 0x307   : > { %v887_v40 = vrot.slane %v886_v39, 1 }
 0x309   : > { %v888_v41 = vadd.f32 %v887_v40, %v886_v39 }
 0x30b   : > { %4248 = vrcp.f32 %v888_v41 }
 0x318   : > { %v4249_v42 = vpop.eup %4248 }
 0x319   : > { %v891_v43 = vmul.f32 %v4249_v42, %v4247_v34  ;;  %v4751_v34 = vld [vmem:[%s5267_s3 + $0x6] ss:$0 sm:$0xff] }
 0x31b   : > { %v892_v44 = vadd.f32 1e-08, %v891_v43  ;;  %v4763_v43 = vld [vmem:[%s5267_s3 + $0x7] ss:$0 sm:$0xff] }
 0x31d   : > { %v893_v45 = vsel %vm871_vm3, %v892_v44, 0.0 }
 0x31e   : > { %894 = vadd.xlane.f32.xlu0 %v893_v45 }
 0x3a7   : > { %v895_v52 = vpop.xlane.xlu0 %894 }
 0x3a8   : > { %4250 = vrcp.f32 %v895_v52 }
 0x3b5   : > { %v4251_v53 = vpop.eup %4250 }
 0x3b6   : > { %v898_v54 = vmul.f32 %v4251_v53, %v892_v44 }
 0x3b8   : > { %3890 = vmatmul.mubr.msk.f32.vlgmr.msra.gmra.mxu0 %vm871_vm3, %v898_v54 }
 0x3b9   : > { %3904 = vmatpush3.msra.mxu0 %v4581_v55  ;;  %3911 = vmatprep.mubr.msk.f32.mxu0 %vm4324_vm1, %v5277_v24 }
 0x3ba   : > { %3905 = vmatprep.subr.mxu0 %v5277_v24 }
 0x3bb   : > { %3906 = vmatpush3.msra.mxu0 %v4587_v56 }
 0x3bc   : > { %3907 = vmatprep.subr.mxu0 %v5277_v24 }
 0x3bd   : > { %3908 = vmatpush3.msra.mxu0 %v4596_v57 }
 0x3be   : > { %3909 = vmatprep.subr.mxu0 %v5277_v24 }
 0x3bf   : > { %3910 = vmatpush3.msra.mxu0 %v4605_v58 }
 0x3c0   : > { %3912 = vmatmul.mubr.msk.f32.vlgmr.msra.gmra.mxu0 %vm461_vm0, %v4407_v0  ;;  %3925 = vmatprep.subr.mxu0 %v5277_v24 }
 0x3c1   : > { %3933 = vmatprep.mubr.msk.f32.mxu0 %vm4324_vm1, %v5277_v24  ;;  %3926 = vmatpush3.msra.mxu0 %v4614_v59 }
 0x3c2   : > { %3927 = vmatprep.subr.mxu0 %v5277_v24 }
 0x3c3   : > { %3928 = vmatpush3.msra.mxu0 %v4623_v60 }
 0x3c4   : > { %3929 = vmatprep.subr.mxu0 %v5277_v24 }
 0x3c5   : > { %3930 = vmatpush3.msra.mxu0 %v4630_v61 }
 0x3c6   : > { %3931 = vmatprep.subr.mxu0 %v5277_v24 }
 0x3c7   : > { %3932 = vmatpush3.msra.mxu0 %v4637_v62 }
 0x3c8   : > { %3934 = vmatmul.mubr.msk.f32.vlgmr.msra.gmra.mxu0 %vm461_vm0, %v4407_v0  ;;  %3947 = vmatprep.subr.mxu0 %v5277_v24 }
 0x3c9   : > { %3955 = vmatprep.mubr.msk.f32.mxu0 %vm4324_vm1, %v5277_v24  ;;  %3948 = vmatpush3.msra.mxu0 %v4648_v63 }
 0x3ca   : > { %3949 = vmatprep.subr.mxu0 %v5277_v24 }
 0x3cb   : > { %3950 = vmatpush3.msra.mxu0 %v4653_v1 }
 0x3cc   : > { %3951 = vmatprep.subr.mxu0 %v5277_v24 }
 0x3cd   : > { %3952 = vmatpush3.msra.mxu0 %v4660_v2 }
 0x3ce   : > { %3953 = vmatprep.subr.mxu0 %v5277_v24 }
 0x3cf   : > { %3954 = vmatpush3.msra.mxu0 %v4667_v3 }
 0x3d0   : > { %3956 = vmatmul.mubr.msk.f32.vlgmr.msra.gmra.mxu0 %vm461_vm0, %v4407_v0  ;;  %3969 = vmatprep.subr.mxu0 %v5277_v24 }
 0x3d1   : > { %3985 = vmatprep.mubr.msk.f32.mxu0 %vm4324_vm1, %v5277_v24 }
 0x478   : > { %v968_v6 = vpop.f32.mrf.mxu0 }
 0x479   : > { %3901 = vmatmul.mubr.msk.f32.vlgmr.msra.gmra.mxu1 %vm461_vm0, %v968_v6 }
 0x47a   : > { %3915 = vmatpush3.msra.mxu1 %v4680_v4  ;;  %v3891_v9 = vpop.f32.mrf.mxu0  ;;  %3922 = vmatprep.mubr.msk.f32.mxu1 %vm4324_vm1, %v5277_v24 }
 0x47b   : > { %3916 = vmatprep.subr.mxu1 %v5277_v24 }
 0x47c   : > { %3917 = vmatpush3.msra.mxu1 %v4686_v7 }
 0x47d   : > { %3918 = vmatprep.subr.mxu1 %v5277_v24 }
 0x47e   : > { %3919 = vmatpush3.msra.mxu1 %v4695_v10 }
 0x47f   : > { %3920 = vmatprep.subr.mxu1 %v5277_v24 }
 0x480   : > { %3921 = vmatpush3.msra.mxu1 %v4702_v12  ;;  %v1126_v20 = vpop.f32.mrf.mxu0 }
 0x481   : > { %3923 = vmatmul.mubr.msk.f32.vlgmr.msra.gmra.mxu1 %vm461_vm0, %v968_v6  ;;  %3936 = vmatprep.subr.mxu1 %v5277_v24 }
 0x482   : > { %3937 = vmatpush3.msra.mxu1 %v4709_v15  ;;  %3944 = vmatprep.mubr.msk.f32.mxu1 %vm4324_vm1, %v5277_v24  ;;  %v3913_v21 = vpop.f32.mrf.mxu0 }
 0x483   : > { %3938 = vmatprep.subr.mxu1 %v5277_v24  ;;  %v4769_v21 = vld [vmem:[%s5267_s3 + $0x8] ss:$0 sm:$0xff] }
 0x484   : > { %3939 = vmatpush3.msra.mxu1 %v4717_v17 }
 0x485   : > { %3940 = vmatprep.subr.mxu1 %v5277_v24 }
 0x486   : > { %3941 = vmatpush3.msra.mxu1 %v4726_v18 }
 0x487   : > { %3942 = vmatprep.subr.mxu1 %v5277_v24 }
 0x488   : > { %3943 = vmatpush3.msra.mxu1 %v4733_v19  ;;  %v1292_v22 = vpop.f32.mrf.mxu0 }
 0x489   : > { %3945 = vmatmul.mubr.msk.f32.vlgmr.msra.gmra.mxu1 %vm461_vm0, %v968_v6  ;;  %3958 = vmatprep.subr.mxu1 %v5277_v24 }
 0x48a   : > { %3966 = vmatprep.mubr.msk.f32.mxu1 %vm4324_vm1, %v5277_v24  ;;  %v3935_v26 = vpop.f32.mrf.mxu0 }
 0x490   : > { %v1462_v27 = vpop.f32.mrf.mxu0 }
 0x492   : > { %v3957_v29 = vpop.f32.mrf.mxu0 }
 0x493   : > { %v1463_v29 = vadd.f32 %v4769_v21, %v1462_v27 }
 0x539   : > { %v1049_v32 = vpop.f32.mrf.mxu1 }
 0x53a   : > { %v1050_v33 = vadd.f32 %v4745_v31, %v1049_v32 }
 0x53b   : > { %v3902_v35 = vpop.f32.mrf.mxu1 }
 0x53c   : > { %v1130_v36 = vadd.f32 %v1126_v20, %v1050_v33 }
 0x53e   : > { %v1135_v37 = vadd.f32 %v4751_v34, %v1130_v36 }
 0x540   : > { %v3588_v39 = vmul.f32 -1.442695, %v1135_v37 }
 0x541   : > { %v1217_v40 = vpop.f32.mrf.mxu1 }
 0x542   : > { %4252 = vpow2.f32 %v3588_v39  ;;  %v1218_v41 = vadd.f32 %v4757_v38, %v1217_v40 }
 0x543   : > { %v3924_v42 = vpop.f32.mrf.mxu1 }
 0x544   : > { %v1296_v44 = vadd.f32 %v1292_v22, %v1218_v41  ;;  %v4775_v22 = vld [vmem:[%s5267_s3 + $0x5] ss:$0 sm:$0xff] }
 0x546   : > { %v1301_v45 = vadd.f32 %v4763_v43, %v1296_v44 }
 0x548   : > { %v3601_v52 = vmul.f32 -1.442695, %v1301_v45 }
 0x549   : > { %v1383_v53 = vpop.f32.mrf.mxu1 }
 0x54a   : > { %4254 = vpow2.f32 %v3601_v52  ;;  %v1384_v33 = vadd.f32 %v4775_v22, %v1383_v53 }
 0x54b   : > { %v3946_v54 = vpop.f32.mrf.mxu1 }
 0x54f   : > { %v4253_v6 = vpop.eup %4252 }
 0x550   : > { %v1139_v9 = vadd.f32 1.0, %v4253_v6 }
 0x552   : > { %4256 = vrcp.f32 %v1139_v9  ;;  %v4788_v9 = vld [vmem:[%s5273_s9 + $0x18] sm:$0xff] }
 0x553   : > { %3959 = vmatpush3.msra.mxu1 %v4788_v9 }
 0x554   : > { %3960 = vmatprep.subr.mxu1 %v5277_v24 }
 0x557   : > { %v4255_v20 = vpop.eup %4254 }
 0x558   : > { %v1305_v26 = vadd.f32 1.0, %v4255_v20  ;;  %v4800_v20 = vld [vmem:[%s5273_s9 + $0x8] sm:$0xff] }
 0x55a   : > { %4258 = vrcp.f32 %v1305_v26  ;;  %v4807_v26 = vld [vmem:[%s5273_s9] sm:$0xff] }
 0x55f   : > { %v4257_v32 = vpop.eup %4256 }
 0x560   : > { %v1466_v35 = vmul.f32 %v4257_v32, %v1463_v29  ;;  %v4815_v29 = vld [vmem:[%s5274_s10 + $0x38] sm:$0xff]  ;;  %v4820_v32 = vld [vmem:[%s5274_s10 + $0x30] sm:$0xff] }
 0x561   : > { %3970 = vmatpush3.msra.mxu0 %v4815_v29 }
 0x562   : > { %v1467_v36 = vadd.f32 %v1466_v35, %v1384_v33  ;;  %3971 = vmatprep.subr.mxu0 %v5277_v24  ;;  %v4828_v33 = vld [vmem:[%s5274_s10 + $0x28] sm:$0xff]  ;;  %v4835_v35 = vld [vmem:[%s5274_s10 + $0x20] sm:$0xff] }
 0x563   : > { %3972 = vmatpush3.msra.mxu0 %v4820_v32 }
 0x564   : > { %4260 = vtanh.f32 %v1467_v36  ;;  %3973 = vmatprep.subr.mxu0 %v5277_v24  ;;  %v4842_v36 = vld [vmem:[%s5274_s10 + $0x18] sm:$0xff] }
 0x565   : > { %3974 = vmatpush3.msra.mxu0 %v4828_v33 }
 0x566   : > { %3975 = vmatprep.subr.mxu0 %v5277_v24 }
 0x567   : > { %v4259_v37 = vpop.eup %4258  ;;  %3976 = vmatpush3.msra.mxu0 %v4835_v35 }
 0x568   : > { %v1469_v39 = vsub.f32 1.0, %v4259_v37  ;;  %v1471_v42 = vmul.f32 %v4259_v37, %v4407_v0  ;;  %v4794_v0 = vld [vmem:[%s5273_s9 + $0x10] sm:$0xff]  ;;  %3977 = vmatprep.subr.mxu0 %v5277_v24 }
 0x569   : > { %3961 = vmatpush3.msra.mxu1 %v4794_v0  ;;  %v4849_v37 = vld [vmem:[%s5274_s10 + $0x10] sm:$0xff]  ;;  %3978 = vmatpush3.msra.mxu0 %v4842_v36 }
 0x56a   : > { %3962 = vmatprep.subr.mxu1 %v5277_v24  ;;  %5292 = vst [vmem:[#allocation7_spill] sm:$0xff] %v4849_v37  ;;  %3979 = vmatprep.subr.mxu0 %v5277_v24 }
 0x56b   : > { %3963 = vmatpush3.msra.mxu1 %v4800_v20  ;;  %3980 = vmatpush3.msra.mxu0 %v4849_v37 }
 0x56c   : > { %3964 = vmatprep.subr.mxu1 %v5277_v24  ;;  %3981 = vmatprep.subr.mxu0 %v5277_v24 }
 0x56d   : > { %3965 = vmatpush3.msra.mxu1 %v4807_v26 }
 0x56e   : > { %3988 = vmatprep.subr.mxu1 %v5277_v24 }
 0x571   : > { %v4261_v40 = vpop.eup %4260 }
 0x572   : > { %v1470_v41 = vmul.f32 %v4261_v40, %v1469_v39 }
 0x574   : > { %v4779_v44 = vadd.f32 %v1471_v42, %v1470_v41 }
 0x576   : > { %v1473_v27 = vsel %vm461_vm0, %v4779_v44, 0.0 }
 0x577   : > { %1474 = vadd.xlane.f32.xlu1 %v1473_v27  ;;  %v4858_v27 = vld [vmem:[%s5266_s2 + $0x4] ss:$0 sm:$0xff] }
 0x600   : > { %v1475_v45 = vpop.xlane.xlu1 %1474 }
 0x601   : > { %v1476_v52 = vmul.f32 0.03125, %v1475_v45 }
 0x603   : > { %v1477_v54 = vsub.f32 %v4779_v44, %v1476_v52  ;;  %v4863_v52 = vld [vmem:[%s5266_s2 + $0x5] ss:$0 sm:$0xff] }
 0x604   : > { %5293 = vst [vmem:[#allocation8_spill] sm:$0xff] %v4863_v52 }
 0x605   : > { %v1478_v53 = vmul.f32 %v1477_v54, %v1477_v54 }
 0x607   : > { %v1479_v6 = vsel %vm461_vm0, %v1478_v53, 0.0 }
 0x608   : > { %1480 = vadd.xlane.f32.xlu0 %v1479_v6 }
 0x691   : > { %v1481_v39 = vpop.xlane.xlu0 %1480 }
 0x692   : > { %v1482_v40 = vmul.f32 0.03125, %v1481_v39 }
 0x694   : > { %v1483_v41 = vadd.f32 1e-05, %v1482_v40 }
 0x696   : > { %4262 = vrsqrt.f32 %v1483_v41  ;;  %v4908_v41 = vld [vmem:[%s5267_s3 + $0x9] ss:$0 sm:$0xff] }
 0x6a3   : > { %v4263_v42 = vpop.eup %4262 }
 0x6a4   : > { %v1485_v45 = vmul.f32 %v4263_v42, %v1477_v54 }
 0x6a6   : > { %v1490_v53 = vmul.f32 %v4858_v27, %v1485_v45 }
 0x6a8   : > { %v1495_v6 = vadd.f32 %v4863_v52, %v1490_v53 }
 0x6aa   : > { %3967 = vmatmul.mubr.msk.f32.vlgmr.msra.gmra.mxu1 %vm461_vm0, %v1495_v6 }
 0x6ab   : > { %3989 = vmatpush3.msra.mxu1 %v4430_v23  ;;  %3996 = vmatprep.mubr.msk.f32.mxu1 %vm4324_vm1, %v5277_v24  ;;  %v4881_v23 = vld [vmem:[%s5274_s10 + $0x8] sm:$0xff] }
 0x6ac   : > { %3990 = vmatprep.subr.mxu1 %v5277_v24  ;;  %5294 = vst [vmem:[#allocation9_spill] sm:$0xff] %v4881_v23  ;;  %3982 = vmatpush3.msra.mxu0 %v4881_v23 }
 0x6ad   : > { %3991 = vmatpush3.msra.mxu1 %v4436_v25  ;;  %3983 = vmatprep.subr.mxu0 %v5277_v24  ;;  %v4888_v25 = vld [vmem:[%s5274_s10] sm:$0xff] }
 0x6ae   : > { %3992 = vmatprep.subr.mxu1 %v5277_v24  ;;  %5295 = vst [vmem:[#allocation10_spill] sm:$0xff] %v4888_v25  ;;  %3984 = vmatpush3.msra.mxu0 %v4888_v25 }
 0x6af   : > { %3993 = vmatpush3.msra.mxu1 %v4451_v28  ;;  %4006 = vmatprep.subr.mxu0 %v5277_v24  ;;  %v4895_v28 = vld [vmem:[%s5268_s4] ss:$0 sm:$0xff] }
 0x6b0   : > { %3994 = vmatprep.subr.mxu1 %v5277_v24  ;;  %5296 = vst [vmem:[#allocation11_spill] sm:$0xff] %v4895_v28 }
 0x6b1   : > { %3995 = vmatpush3.msra.mxu1 %v4461_v30 }
 0x6b2   : > { %3999 = vmatprep.subr.mxu1 %v5277_v24 }
 0x76a   : > { %v1575_v30 = vpop.f32.mrf.mxu1 }
 0x76b   : > { %v1576_v54 = vadd.f32 %v4895_v28, %v1575_v30 }
 0x76c   : > { %v3968_v39 = vpop.f32.mrf.mxu1 }
 0x76d   : > { %v1579_v40 = vmax.f32 %v1576_v54, 0.0 }
 0x76f   : > { %3986 = vmatmul.mubr.msk.f32.vlgmr.msra.gmra.mxu0 %vm1588_vm4, %v1579_v40 }
 0x770   : > { %4007 = vmatpush3.msra.mxu0 %v4532_v13  ;;  %4010 = vmatprep.mubr.msk.f32.mxu0 %vm4324_vm1, %v5277_v24 }
 0x771   : > { %4008 = vmatprep.subr.mxu0 %v5277_v24 }
 0x772   : > { %4009 = vmatpush3.msra.mxu0 %v4538_v14 }
 0x773   : > { %4013 = vmatprep.subr.mxu0 %v5277_v24 }
 0x82f   : > { %v1658_v42 = vpop.f32.mrf.mxu0 }
 0x830   : > { %v1662_v45 = vadd.f32 %v1658_v42, %v4779_v44 }
 0x831   : > { %v3987_v53 = vpop.f32.mrf.mxu0 }
 0x832   : > { %v4912_v6 = vadd.f32 %v4908_v41, %v1662_v45 }
 0x834   : > { %v1668_v30 = vsel %vm461_vm0, %v4912_v6, 0.0 }
 0x835   : > { %1669 = vadd.xlane.f32.xlu1 %v1668_v30  ;;  %v5297_v30 = vmov 0.0  }
 0x8be   : > { %v1670_v54 = vpop.xlane.xlu1 %1669 }
 0x8bf   : > { %v1671_v39 = vmul.f32 0.03125, %v1670_v54 }
 0x8c1   : > { %v1672_v40 = vsub.f32 %v4912_v6, %v1671_v39 }
 0x8c3   : > { %v1673_v24 = vmul.f32 %v1672_v40, %v1672_v40 }
 0x8c5   : > { %v1674_v14 = vsel %vm461_vm0, %v1673_v24, 0.0 }
 0x8c6   : > { %1675 = vadd.xlane.f32.xlu0 %v1674_v14 }
 0x94f   : > { %v1676_v13 = vpop.xlane.xlu0 %1675 }
 0x950   : > { %v1677_v28 = vmul.f32 0.03125, %v1676_v13 }
 0x952   : > { %v1678_v52 = vadd.f32 1e-05, %v1677_v28 }
 0x954   : > { %4264 = vrsqrt.f32 %v1678_v52 }
 0x961   : > { %v4265_v44 = vpop.eup %4264 }
 0x962   : > { %v1680_v42 = vmul.f32 %v4265_v44, %v1672_v40 }
 0x964   : > { %v1681_v45 = vmul.f32 %v4476_v46, %v1680_v42 }
 0x966   : > { %v1682_v53 = vadd.f32 %v4482_v51, %v1681_v45 }
 0x968   : > { %3997 = vmatmul.mubr.msk.f32.vlgmr.msra.gmra.mxu1 %vm461_vm0, %v1682_v53 }
 0x969   : > { %4000 = vmatpush3.xpose.msk.msra.mxu1 %vm461_vm0, %v4518_v8  ;;  %4003 = vmatprep.mubr.msk.f32.mxu1 %vm4324_vm1, %v5297_v30 }
 0x96a   : > { %4001 = vmatprep.subr.mxu1 %v5297_v30 }
 0x96d   : > { %4002 = vmatpush3.xpose.msk.msra.mxu1 %vm461_vm0, %v4526_v11 }
 0x96e   : > { %4024 = vmatprep.subr.mxu1 %v5297_v30 }
 0xa28   : > { %v1752_v24 = vpop.f32.mrf.mxu1 }
 0xa29   : > { %v1753_v46 = vadd.f32 %v4516_v5, %v1752_v24 }
 0xa2a   : > { %v3998_v13 = vpop.f32.mrf.mxu1 }
 0xa2b   : > { %v1756_v51 = vmul.f32 0.17677669, %v1753_v46 }
 0xa2d   : > { %4004 = vmatmul.mubr.msk.f32.vlgmr.msra.gmra.mxu1 %vm461_vm0, %v1756_v51 }
 0xa2e   : > { %4025 = vmatpush3.msra.mxu1 %v4581_v55  ;;  %4032 = vmatprep.mubr.msk.f32.mxu1 %vm4324_vm1, %v5297_v30 }
 0xa2f   : > { %4026 = vmatprep.subr.mxu1 %v5297_v30 }
 0xa30   : > { %4027 = vmatpush3.msra.mxu1 %v4587_v56 }
 0xa31   : > { %4028 = vmatprep.subr.mxu1 %v5297_v30 }
 0xa32   : > { %4029 = vmatpush3.msra.mxu1 %v4596_v57 }
 0xa33   : > { %4030 = vmatprep.subr.mxu1 %v5297_v30 }
 0xa34   : > { %4031 = vmatpush3.msra.mxu1 %v4605_v58 }
 0xa35   : > { %4033 = vmatmul.mubr.msk.f32.vlgmr.msra.gmra.mxu1 %vm461_vm0, %v4912_v6  ;;  %4046 = vmatprep.subr.mxu1 %v5297_v30 }
 0xa36   : > { %4047 = vmatpush3.msra.mxu1 %v4614_v59  ;;  %4054 = vmatprep.mubr.msk.f32.mxu1 %vm4324_vm1, %v5297_v30 }
 0xa37   : > { %4048 = vmatprep.subr.mxu1 %v5297_v30 }
 0xa38   : > { %4049 = vmatpush3.msra.mxu1 %v4623_v60 }
 0xa39   : > { %4050 = vmatprep.subr.mxu1 %v5297_v30 }
 0xa3a   : > { %4051 = vmatpush3.msra.mxu1 %v4630_v61 }
 0xa3b   : > { %4052 = vmatprep.subr.mxu1 %v5297_v30 }
 0xa3c   : > { %4053 = vmatpush3.msra.mxu1 %v4637_v62 }
 0xa3d   : > { %4055 = vmatmul.mubr.msk.f32.vlgmr.msra.gmra.mxu1 %vm461_vm0, %v4912_v6  ;;  %4068 = vmatprep.subr.mxu1 %v5297_v30 }
 0xa3e   : > { %4069 = vmatpush3.msra.mxu1 %v4648_v63  ;;  %4076 = vmatprep.mubr.msk.f32.mxu1 %vm4324_vm1, %v5297_v30 }
 0xa3f   : > { %4070 = vmatprep.subr.mxu1 %v5297_v30 }
 0xa40   : > { %4071 = vmatpush3.msra.mxu1 %v4653_v1 }
 0xa41   : > { %4072 = vmatprep.subr.mxu1 %v5297_v30 }
 0xa42   : > { %4073 = vmatpush3.msra.mxu1 %v4660_v2 }
 0xa43   : > { %4074 = vmatprep.subr.mxu1 %v5297_v30 }
 0xa44   : > { %4075 = vmatpush3.msra.mxu1 %v4667_v3 }
 0xa45   : > { %4077 = vmatmul.mubr.msk.f32.vlgmr.msra.gmra.mxu1 %vm461_vm0, %v4912_v6  ;;  %4090 = vmatprep.subr.mxu1 %v5297_v30 }
 0xa46   : > { %4091 = vmatpush3.msra.mxu1 %v4815_v29  ;;  %4106 = vmatprep.mubr.msk.f32.mxu1 %vm4324_vm1, %v5297_v30 }
 0xa47   : > { %4092 = vmatprep.subr.mxu1 %v5297_v30 }
 0xa48   : > { %4093 = vmatpush3.msra.mxu1 %v4820_v32 }
 0xa49   : > { %4094 = vmatprep.subr.mxu1 %v5297_v30 }
 0xa4a   : > { %4095 = vmatpush3.msra.mxu1 %v4828_v33 }
 0xa4b   : > { %4096 = vmatprep.subr.mxu1 %v5297_v30 }
 0xa4c   : > { %4097 = vmatpush3.msra.mxu1 %v4835_v35 }
 0xa4d   : > { %4098 = vmatprep.subr.mxu1 %v5297_v30 }
 0xa4e   : > { %4099 = vmatpush3.msra.mxu1 %v4842_v36 }
 0xa4f   : > { %4100 = vmatprep.subr.mxu1 %v5297_v30 }
 0xa50   : > { %4101 = vmatpush3.msra.mxu1 %v4849_v37 }
 0xa51   : > { %4102 = vmatprep.subr.mxu1 %v5297_v30 }
 0xa52   : > { %4103 = vmatpush3.msra.mxu1 %v4881_v23 }
 0xa53   : > { %4104 = vmatprep.subr.mxu1 %v5297_v30 }
 0xa54   : > { %4105 = vmatpush3.msra.mxu1 %v4888_v25 }
 0xa55   : > { %4127 = vmatprep.subr.mxu1 %v5297_v30 }
 0xaed   : > { %v1826_v5 = vpop.f32.mrf.mxu1 }
 0xaee   : > { %v1830_v8 = vsel %vm869_vm2, %v1826_v5, -1e+30 }
 0xaef   : > { %v1831_v14 = vsel %vm871_vm3, %v1830_v8, -inf  ;;  %v4005_v52 = vpop.f32.mrf.mxu1 }
 0xaf0   : > { %v1832_v28 = vrot.slane %v1831_v14, 4 }
 0xaf2   : > { %v1833_v54 = vmax.f32 %v1831_v14, %v1832_v28 }
 0xaf4   : > { %v1834_v39 = vrot.slane %v1833_v54, 2 }
 0xaf5   : > { %v4988_v40 = vpop.f32.mrf.mxu1 }
 0xaf6   : > { %v1835_v44 = vmax.f32 %v1833_v54, %v1834_v39 }
 0xaf7   : > { %v4034_v42 = vpop.f32.mrf.mxu1 }
 0xaf8   : > { %v1836_v45 = vrot.slane %v1835_v44, 1 }
 0xafa   : > { %v1837_v53 = vmax.f32 %v1835_v44, %v1836_v45 }
 0xafc   : > { %v1838_v24 = vsub.f32 %v1830_v8, %v1837_v53 }
 0xafd   : > { %v4990_v46 = vpop.f32.mrf.mxu1 }
 0xafe   : > { %v1839_v13 = vmul.f32 1.442695, %v1838_v24 }
 0xaff   : > { %v4056_v51 = vpop.f32.mrf.mxu1 }
 0xb00   : > { %4266 = vpow2.f32 %v1839_v13 }
 0xb05   : > { %v4992_v16 = vpop.f32.mrf.mxu1 }
 0xb07   : > { %v4078_v5 = vpop.f32.mrf.mxu1 }
 0xb0d   : > { %v4267_v25 = vpop.eup %4266 }
 0xb0e   : > { %v1841_v52 = vsel %vm871_vm3, %v4267_v25, 0.0 }
 0xb0f   : > { %v1842_v14 = vrot.slane %v1841_v52, 4 }
 0xb11   : > { %v1843_v28 = vadd.f32 %v1842_v14, %v1841_v52 }
 0xb13   : > { %v1844_v23 = vrot.slane %v1843_v28, 2 }
 0xb15   : > { %v1845_v37 = vadd.f32 %v1844_v23, %v1843_v28 }
 0xb17   : > { %v1846_v54 = vrot.slane %v1845_v37, 1 }
 0xb19   : > { %v1847_v39 = vadd.f32 %v1846_v54, %v1845_v37 }
 0xb1b   : > { %4268 = vrcp.f32 %v1847_v39  ;;  %v2370_v39 = vadd.f32 %v4769_v21, %v4992_v16 }
 0xb28   : > { %v4269_v44 = vpop.eup %4268 }
 0xb29   : > { %v1850_v8 = vmul.f32 %v4269_v44, %v4267_v25 }
 0xb2b   : > { %v1851_v42 = vadd.f32 1e-08, %v1850_v8 }
 0xb2d   : > { %v1852_v45 = vsel %vm871_vm3, %v1851_v42, 0.0 }
 0xb2e   : > { %1853 = vadd.xlane.f32.xlu1 %v1852_v45 }
 0xbb7   : > { %v1854_v53 = vpop.xlane.xlu1 %1853 }
 0xbb8   : > { %4270 = vrcp.f32 %v1854_v53 }
 0xbc5   : > { %v4271_v24 = vpop.eup %4270 }
 0xbc6   : > { %v1857_v13 = vmul.f32 %v4271_v24, %v1851_v42 }
 0xbc8   : > { %4011 = vmatmul.mubr.msk.f32.vlgmr.msra.gmra.mxu0 %vm871_vm3, %v1857_v13 }
 0xbc9   : > { %4014 = vmatpush3.msra.mxu0 %v4553_v47  ;;  %4021 = vmatprep.mubr.msk.f32.mxu0 %vm4324_vm1, %v5297_v30 }
 0xbca   : > { %4015 = vmatprep.subr.mxu0 %v5297_v30 }
 0xbcb   : > { %4016 = vmatpush3.msra.mxu0 %v4559_v48 }
 0xbcc   : > { %4017 = vmatprep.subr.mxu0 %v5297_v30 }
 0xbcd   : > { %4018 = vmatpush3.msra.mxu0 %v4566_v49 }
 0xbce   : > { %4019 = vmatprep.subr.mxu0 %v5297_v30 }
 0xbcf   : > { %4020 = vmatpush3.msra.mxu0 %v4573_v50 }
 0xbd0   : > { %4035 = vmatprep.subr.mxu0 %v5297_v30 }
 0xc88   : > { %v1927_v37 = vpop.f32.mrf.mxu0 }
 0xc89   : > { %4022 = vmatmul.mubr.msk.f32.vlgmr.msra.gmra.mxu0 %vm461_vm0, %v1927_v37 }
 0xc8a   : > { %4036 = vmatpush3.msra.mxu0 %v4680_v4  ;;  %v4012_v47 = vpop.f32.mrf.mxu0  ;;  %4043 = vmatprep.mubr.msk.f32.mxu0 %vm4324_vm1, %v5297_v30 }
 0xc8b   : > { %4037 = vmatprep.subr.mxu0 %v5297_v30 }
 0xc8c   : > { %4038 = vmatpush3.msra.mxu0 %v4686_v7 }
 0xc8d   : > { %4039 = vmatprep.subr.mxu0 %v5297_v30 }
 0xc8e   : > { %4040 = vmatpush3.msra.mxu0 %v4695_v10 }
 0xc8f   : > { %4041 = vmatprep.subr.mxu0 %v5297_v30 }
 0xc90   : > { %4042 = vmatpush3.msra.mxu0 %v4702_v12 }
 0xc91   : > { %4044 = vmatmul.mubr.msk.f32.vlgmr.msra.gmra.mxu0 %vm461_vm0, %v1927_v37  ;;  %4057 = vmatprep.subr.mxu0 %v5297_v30 }
 0xc92   : > { %4058 = vmatpush3.msra.mxu0 %v4709_v15  ;;  %4065 = vmatprep.mubr.msk.f32.mxu0 %vm4324_vm1, %v5297_v30 }
 0xc93   : > { %4059 = vmatprep.subr.mxu0 %v5297_v30 }
 0xc94   : > { %4060 = vmatpush3.msra.mxu0 %v4717_v17 }
 0xc95   : > { %4061 = vmatprep.subr.mxu0 %v5297_v30 }
 0xc96   : > { %4062 = vmatpush3.msra.mxu0 %v4726_v18 }
 0xc97   : > { %4063 = vmatprep.subr.mxu0 %v5297_v30 }
 0xc98   : > { %4064 = vmatpush3.msra.mxu0 %v4733_v19 }
 0xc99   : > { %4066 = vmatmul.mubr.msk.f32.vlgmr.msra.gmra.mxu0 %vm461_vm0, %v1927_v37  ;;  %4079 = vmatprep.subr.mxu0 %v5297_v30 }
 0xc9a   : > { %4080 = vmatpush3.msra.mxu0 %v4788_v9  ;;  %4087 = vmatprep.mubr.msk.f32.mxu0 %vm4324_vm1, %v5297_v30 }
 0xc9b   : > { %4081 = vmatprep.subr.mxu0 %v5297_v30 }
 0xc9c   : > { %4082 = vmatpush3.msra.mxu0 %v4794_v0 }
 0xc9d   : > { %4083 = vmatprep.subr.mxu0 %v5297_v30 }
 0xc9e   : > { %4084 = vmatpush3.msra.mxu0 %v4800_v20 }
 0xc9f   : > { %4085 = vmatprep.subr.mxu0 %v5297_v30 }
 0xca0   : > { %4086 = vmatpush3.msra.mxu0 %v4807_v26 }
 0xca1   : > { %4109 = vmatprep.subr.mxu0 %v5297_v30 }
 0xd49   : > { %v2000_v48 = vpop.f32.mrf.mxu0 }
 0xd4a   : > { %v2001_v49 = vadd.f32 %v4745_v31, %v2000_v48 }
 0xd4b   : > { %v4023_v50 = vpop.f32.mrf.mxu0 }
 0xd4c   : > { %v2077_v4 = vadd.f32 %v4988_v40, %v2001_v49 }
 0xd4e   : > { %v2078_v7 = vadd.f32 %v4751_v34, %v2077_v4 }
 0xd50   : > { %v3627_v10 = vmul.f32 -1.442695, %v2078_v7 }
 0xd51   : > { %v2151_v12 = vpop.f32.mrf.mxu0 }
 0xd52   : > { %4272 = vpow2.f32 %v3627_v10  ;;  %v2152_v15 = vadd.f32 %v4757_v38, %v2151_v12 }
 0xd53   : > { %v4045_v17 = vpop.f32.mrf.mxu0 }
 0xd54   : > { %v2225_v23 = vadd.f32 %v4990_v46, %v2152_v15 }
 0xd56   : > { %v2226_v25 = vadd.f32 %v4763_v43, %v2225_v23 }
 0xd58   : > { %v3630_v51 = vmul.f32 -1.442695, %v2226_v25 }
 0xd59   : > { %v2299_v5 = vpop.f32.mrf.mxu0 }
 0xd5a   : > { %4274 = vpow2.f32 %v3630_v51  ;;  %v2300_v8 = vadd.f32 %v4775_v22, %v2299_v5  ;;  %v4304_v5 = vld [vmem:[%s5269_s5 + $0x18] sm:$0xff] }
 0xd5b   : > { %v4067_v52 = vpop.f32.mrf.mxu0 }
 0xd5c   : > { %v4305_v52 = vld [vmem:[%s5269_s5 + $0x10] sm:$0xff] }
 0xd5f   : > { %v4273_v14 = vpop.eup %4272 }
 0xd60   : > { %v2082_v28 = vadd.f32 1.0, %v4273_v14  ;;  %v4306_v14 = vld [vmem:[%s5269_s5 + $0x8] sm:$0xff] }
 0xd62   : > { %4276 = vrcp.f32 %v2082_v28  ;;  %v4307_v28 = vld [vmem:[%s5269_s5] sm:$0xff] }
 0xd67   : > { %v4275_v40 = vpop.eup %4274 }
 0xd68   : > { %v2230_v54 = vadd.f32 1.0, %v4275_v40 }
 0xd6a   : > { %4278 = vrcp.f32 %v2230_v54  ;;  %v5299_v54 = vld [vmem:[#allocation11_spill] sm:$0xff] }
 0xd6f   : > { %v4277_v44 = vpop.eup %4276 }
 0xd70   : > { %v2373_v42 = vmul.f32 %v4277_v44, %v2370_v39 }
 0xd72   : > { %v2374_v46 = vadd.f32 %v2373_v42, %v2300_v8  ;;  %v5300_v42 = vld [vmem:[#allocation4_spill] sm:$0xff] }
 0xd74   : > { %4280 = vtanh.f32 %v2374_v46  ;;  %v5301_v46 = vld [vmem:[#allocation5_spill] sm:$0xff] }
 0xd77   : > { %v4279_v45 = vpop.eup %4278 }
 0xd78   : > { %v2376_v53 = vsub.f32 1.0, %v4279_v45  ;;  %v2378_v37 = vmul.f32 %v4279_v45, %v4912_v6  ;;  %v5298_v6 = vld [vmem:[#allocation8_spill] sm:$0xff] }
 0xd81   : > { %v4281_v24 = vpop.eup %4280 }
 0xd82   : > { %v2377_v13 = vmul.f32 %v4281_v24, %v2376_v53 }
 0xd84   : > { %v2379_v47 = vadd.f32 %v2378_v37, %v2377_v13 }
 0xd86   : > { %v2380_v48 = vsel %vm461_vm0, %v2379_v47, 0.0 }
 0xd87   : > { %2381 = vadd.xlane.f32.xlu0 %v2380_v48 }
 0xe10   : > { %v2382_v49 = vpop.xlane.xlu0 %2381 }
 0xe11   : > { %v2383_v50 = vmul.f32 0.03125, %v2382_v49 }
 0xe13   : > { %v2384_v16 = vsub.f32 %v2379_v47, %v2383_v50 }
 0xe15   : > { %v2385_v4 = vmul.f32 %v2384_v16, %v2384_v16 }
 0xe17   : > { %v2386_v7 = vsel %vm461_vm0, %v2385_v4, 0.0 }
 0xe18   : > { %2387 = vadd.xlane.f32.xlu1 %v2386_v7 }
 0xea1   : > { %v2388_v10 = vpop.xlane.xlu1 %2387 }
 0xea2   : > { %v2389_v12 = vmul.f32 0.03125, %v2388_v10 }
 0xea4   : > { %v2390_v15 = vadd.f32 1e-05, %v2389_v12 }
 0xea6   : > { %4282 = vrsqrt.f32 %v2390_v15 }
 0xeb3   : > { %v4283_v17 = vpop.eup %4282 }
 0xeb4   : > { %v2392_v23 = vmul.f32 %v4283_v17, %v2384_v16  ;;  %v4308_v17 = vld [vmem:[%s5266_s2 + $0x2] ss:$0 sm:$0xff] }
 0xeb6   : > { %v2393_v25 = vmul.f32 %v4858_v27, %v2392_v23 }
 0xeb8   : > { %v2394_v51 = vadd.f32 %v5298_v6, %v2393_v25  ;;  %v4309_v25 = vld [vmem:[%s5266_s2 + $0x3] ss:$0 sm:$0xff] }
 0xeba   : > { %4088 = vmatmul.mubr.msk.f32.vlgmr.msra.gmra.mxu0 %vm461_vm0, %v2394_v51 }
 0xebb   : > { %4110 = vmatpush3.msra.mxu0 %v4304_v5  ;;  %4117 = vmatprep.mubr.msk.f32.mxu0 %vm4324_vm1, %v5297_v30  ;;  %v4310_v5 = vld [vmem:[#allocation2 + $0x8] sm:$0xff] }
 0xebc   : > { %4111 = vmatprep.subr.mxu0 %v5297_v30 }
 0xebd   : > { %4112 = vmatpush3.msra.mxu0 %v4305_v52 }
 0xebe   : > { %4113 = vmatprep.subr.mxu0 %v5297_v30 }
 0xebf   : > { %4114 = vmatpush3.msra.mxu0 %v4306_v14  ;;  %v4311_v14 = vld [vmem:[%s5267_s3] ss:$0 sm:$0xff] }
 0xec0   : > { %4115 = vmatprep.subr.mxu0 %v5297_v30 }
 0xec1   : > { %4116 = vmatpush3.msra.mxu0 %v4307_v28 }
 0xec2   : > { %4120 = vmatprep.subr.mxu0 %v5297_v30 }
 0xf7a   : > { %v2464_v40 = vpop.f32.mrf.mxu0 }
 0xf7b   : > { %v2465_v39 = vadd.f32 %v5299_v54, %v2464_v40 }
 0xf7c   : > { %v4089_v44 = vpop.f32.mrf.mxu0 }
 0xf7d   : > { %v2468_v8 = vmax.f32 %v2465_v39, 0.0 }
 0xf7f   : > { %4107 = vmatmul.mubr.msk.f32.vlgmr.msra.gmra.mxu1 %vm1588_vm4, %v2468_v8 }
 0xf80   : > { %4128 = vmatpush3.msra.mxu1 %v5300_v42  ;;  %4131 = vmatprep.mubr.msk.f32.mxu1 %vm4324_vm1, %v5297_v30 }
 0xf81   : > { %4129 = vmatprep.subr.mxu1 %v5297_v30 }
 0xf82   : > { %4130 = vmatpush3.msra.mxu1 %v5301_v46 }
 0xf83   : > { %4134 = vmatprep.subr.mxu1 %v5297_v30 }
0x103f   : > { %v2538_v45 = vpop.f32.mrf.mxu1 }
0x1040   : > { %v2542_v53 = vadd.f32 %v2538_v45, %v2379_v47 }
0x1041   : > { %v4108_v24 = vpop.f32.mrf.mxu1 }
0x1042   : > { %v5082_v13 = vadd.f32 %v4908_v41, %v2542_v53 }
0x1044   : > { %v2544_v37 = vsel %vm461_vm0, %v5082_v13, 0.0 }
0x1045   : > { %2545 = vadd.xlane.f32.xlu0 %v2544_v37 }
0x10ce   : > { %v2546_v48 = vpop.xlane.xlu0 %2545 }
0x10cf   : > { %v2547_v49 = vmul.f32 0.03125, %v2546_v48 }
0x10d1   : > { %v2548_v50 = vsub.f32 %v5082_v13, %v2547_v49 }
0x10d3   : > { %v2549_v16 = vmul.f32 %v2548_v50, %v2548_v50 }
0x10d5   : > { %v2550_v4 = vsel %vm461_vm0, %v2549_v16, 0.0 }
0x10d6   : > { %2551 = vadd.xlane.f32.xlu1 %v2550_v4 }
0x115f   : > { %v2552_v7 = vpop.xlane.xlu1 %2551 }
0x1160   : > { %v2553_v10 = vmul.f32 0.03125, %v2552_v7 }
0x1162   : > { %v2554_v12 = vadd.f32 1e-05, %v2553_v10 }
0x1164   : > { %4284 = vrsqrt.f32 %v2554_v12 }
0x1171   : > { %v4285_v47 = vpop.eup %4284 }
0x1172   : > { %v2556_v15 = vmul.f32 %v4285_v47, %v2548_v50 }
0x1174   : > { %v2557_v23 = vmul.f32 %v4308_v17, %v2556_v15 }
0x1176   : > { %v2558_v51 = vadd.f32 %v4309_v25, %v2557_v23  ;;  %v2811_v23 = vld [vmem:[%s5271_s7 + $0x18] sm:$0xff]  ;;  %v2810_v25 = vld [vmem:[%s5271_s7 + $0x10] sm:$0xff] }
0x1178   : > { %4118 = vmatmul.mubr.msk.f32.vlgmr.msra.gmra.mxu0 %vm461_vm0, %v2558_v51  ;;  %v2809_v51 = vld [vmem:[%s5271_s7 + $0x8] sm:$0xff] }
0x1179   : > { %4121 = vmatpush3.xpose.msk.msra.mxu0 %vm461_vm0, %v4310_v5  ;;  %4124 = vmatprep.mubr.msk.f32.mxu0 %vm4324_vm1, %v5297_v30  ;;  %v2808_v5 = vld [vmem:[%s5271_s7] sm:$0xff] }
0x117a   : > { %4122 = vmatprep.subr.mxu0 %v5297_v30 }
0x117d   : > { %4123 = vmatpush3.xpose.msk.msra.mxu0 %vm461_vm0, %v4526_v11  ;;  %v5302_v11 = vld [vmem:[#allocation7_spill] sm:$0xff] }
0x117e   : > { %4145 = vmatprep.subr.mxu0 %v5297_v30 }
0x1238   : > { %v2628_v52 = vpop.f32.mrf.mxu0 }
0x1239   : > { %v2629_v28 = vadd.f32 %v4311_v14, %v2628_v52  ;;  %v3646_v52 = vld [vmem:[%s5271_s7 + $0x38] sm:$0xff] }
0x123a   : > { %v4119_v40 = vpop.f32.mrf.mxu0 }
0x123b   : > { %v2632_v39 = vmul.f32 0.17677669, %v2629_v28  ;;  %v3645_v28 = vld [vmem:[%s5271_s7 + $0x30] sm:$0xff] }
0x123d   : > { %4125 = vmatmul.mubr.msk.f32.vlgmr.msra.gmra.mxu0 %vm461_vm0, %v2632_v39  ;;  %v3644_v39 = vld [vmem:[%s5271_s7 + $0x28] sm:$0xff] }
0x123e   : > { %4146 = vmatpush3.msra.mxu0 %v4581_v55  ;;  %4153 = vmatprep.mubr.msk.f32.mxu0 %vm4324_vm1, %v5297_v30  ;;  %v5303_v55 = vld [vmem:[#allocation9_spill] sm:$0xff] }
0x123f   : > { %4147 = vmatprep.subr.mxu0 %v5297_v30 }
0x1240   : > { %4148 = vmatpush3.msra.mxu0 %v4587_v56  ;;  %v5304_v56 = vld [vmem:[#allocation10_spill] sm:$0xff] }
0x1241   : > { %4149 = vmatprep.subr.mxu0 %v5297_v30 }
0x1242   : > { %4150 = vmatpush3.msra.mxu0 %v4596_v57 }
0x1243   : > { %4151 = vmatprep.subr.mxu0 %v5297_v30 }
0x1244   : > { %4152 = vmatpush3.msra.mxu0 %v4605_v58 }
0x1245   : > { %4154 = vmatmul.mubr.msk.f32.vlgmr.msra.gmra.mxu0 %vm461_vm0, %v5082_v13  ;;  %4167 = vmatprep.subr.mxu0 %v5297_v30 }
0x1246   : > { %4168 = vmatpush3.msra.mxu0 %v4614_v59  ;;  %4175 = vmatprep.mubr.msk.f32.mxu0 %vm4324_vm1, %v5297_v30 }
0x1247   : > { %4169 = vmatprep.subr.mxu0 %v5297_v30 }
0x1248   : > { %4170 = vmatpush3.msra.mxu0 %v4623_v60 }
0x1249   : > { %4171 = vmatprep.subr.mxu0 %v5297_v30 }
0x124a   : > { %4172 = vmatpush3.msra.mxu0 %v4630_v61 }
0x124b   : > { %4173 = vmatprep.subr.mxu0 %v5297_v30 }
0x124c   : > { %4174 = vmatpush3.msra.mxu0 %v4637_v62 }
0x124d   : > { %4176 = vmatmul.mubr.msk.f32.vlgmr.msra.gmra.mxu0 %vm461_vm0, %v5082_v13  ;;  %4189 = vmatprep.subr.mxu0 %v5297_v30 }
0x124e   : > { %4190 = vmatpush3.msra.mxu0 %v4648_v63  ;;  %4197 = vmatprep.mubr.msk.f32.mxu0 %vm4324_vm1, %v5297_v30 }
0x124f   : > { %4191 = vmatprep.subr.mxu0 %v5297_v30 }
0x1250   : > { %4192 = vmatpush3.msra.mxu0 %v4653_v1 }
0x1251   : > { %4193 = vmatprep.subr.mxu0 %v5297_v30 }
0x1252   : > { %4194 = vmatpush3.msra.mxu0 %v4660_v2 }
0x1253   : > { %4195 = vmatprep.subr.mxu0 %v5297_v30 }
0x1254   : > { %4196 = vmatpush3.msra.mxu0 %v4667_v3 }
0x1255   : > { %4198 = vmatmul.mubr.msk.f32.vlgmr.msra.gmra.mxu0 %vm461_vm0, %v5082_v13  ;;  %4211 = vmatprep.subr.mxu0 %v5297_v30 }
0x1256   : > { %4212 = vmatpush3.msra.mxu0 %v4815_v29  ;;  %4227 = vmatprep.mubr.msk.f32.mxu0 %vm4324_vm1, %v5297_v30 }
0x1257   : > { %4213 = vmatprep.subr.mxu0 %v5297_v30 }
0x1258   : > { %4214 = vmatpush3.msra.mxu0 %v4820_v32 }
0x1259   : > { %4215 = vmatprep.subr.mxu0 %v5297_v30 }
0x125a   : > { %4216 = vmatpush3.msra.mxu0 %v4828_v33 }
0x125b   : > { %4217 = vmatprep.subr.mxu0 %v5297_v30 }
0x125c   : > { %4218 = vmatpush3.msra.mxu0 %v4835_v35 }
0x125d   : > { %4219 = vmatprep.subr.mxu0 %v5297_v30 }
0x125e   : > { %4220 = vmatpush3.msra.mxu0 %v4842_v36 }
0x125f   : > { %4221 = vmatprep.subr.mxu0 %v5297_v30 }
0x1260   : > { %4222 = vmatpush3.msra.mxu0 %v5302_v11  ;;  %v4312_v11 = vld [vmem:[%s5271_s7 + $0x20] sm:$0xff] }
0x1261   : > { %4223 = vmatprep.subr.mxu0 %v5297_v30 }
0x1262   : > { %4224 = vmatpush3.msra.mxu0 %v5303_v55  ;;  %v4313_v55 = vld [vmem:[%s5271_s7 + $0x58] sm:$0xff] }
0x1263   : > { %4225 = vmatprep.subr.mxu0 %v5297_v30 }
0x1264   : > { %4226 = vmatpush3.msra.mxu0 %v5304_v56  ;;  %v4314_v56 = vld [vmem:[%s5271_s7 + $0x50] sm:$0xff] }
0x12fd   : > { %v2702_v57 = vpop.f32.mrf.mxu0 }
0x12fe   : > { %v2706_v59 = vsel %vm869_vm2, %v2702_v57, -1e+30 }
0x12ff   : > { %v2707_v60 = vsel %vm871_vm3, %v2706_v59, -inf  ;;  %v4126_v61 = vpop.f32.mrf.mxu0 }
0x1300   : > { %v2708_v62 = vrot.slane %v2707_v60, 4 }
0x1302   : > { %v2709_v63 = vmax.f32 %v2707_v60, %v2708_v62 }
0x1304   : > { %v2710_v1 = vrot.slane %v2709_v63, 2 }
0x1305   : > { %v5162_v2 = vpop.f32.mrf.mxu0 }
0x1306   : > { %v2711_v3 = vmax.f32 %v2709_v63, %v2710_v1 }
0x1307   : > { %v4155_v29 = vpop.f32.mrf.mxu0 }
0x1308   : > { %v2712_v32 = vrot.slane %v2711_v3, 1 }
0x130a   : > { %v2713_v33 = vmax.f32 %v2711_v3, %v2712_v32 }
0x130c   : > { %v2714_v35 = vsub.f32 %v2706_v59, %v2713_v33 }
0x130d   : > { %v5164_v36 = vpop.f32.mrf.mxu0 }
0x130e   : > { %v2715_v44 = vmul.f32 1.442695, %v2714_v35 }
0x130f   : > { %v4177_v8 = vpop.f32.mrf.mxu0 }
0x1310   : > { %4286 = vpow2.f32 %v2715_v44 }
0x1315   : > { %v5166_v42 = vpop.f32.mrf.mxu0 }
0x1317   : > { %v4199_v46 = vpop.f32.mrf.mxu0 }
0x131d   : > { %v4287_v45 = vpop.eup %4286 }
0x131e   : > { %v2717_v53 = vsel %vm871_vm3, %v4287_v45, 0.0 }
0x131f   : > { %v2718_v24 = vrot.slane %v2717_v53, 4 }
0x1321   : > { %v2719_v37 = vadd.f32 %v2718_v24, %v2717_v53 }
0x1323   : > { %v2720_v48 = vrot.slane %v2719_v37, 2 }
0x1325   : > { %v2721_v49 = vadd.f32 %v2720_v48, %v2719_v37 }
0x1327   : > { %v2722_v50 = vrot.slane %v2721_v49, 1 }
0x1329   : > { %v2723_v16 = vadd.f32 %v2722_v50, %v2721_v49 }
0x132b   : > { %4288 = vrcp.f32 %v2723_v16 }
0x1338   : > { %v4289_v4 = vpop.eup %4288 }
0x1339   : > { %v2726_v7 = vmul.f32 %v4289_v4, %v4287_v45 }
0x133b   : > { %v2727_v10 = vadd.f32 1e-08, %v2726_v7 }
0x133d   : > { %v2728_v12 = vsel %vm871_vm3, %v2727_v10, 0.0  ;;  %2807 = vst.msk [vmem:[%s441_s16] sm:$0xff] %vm871_vm3, %v2727_v10 }
0x133e   : > { %2729 = vadd.xlane.f32.xlu0 %v2728_v12 }
0x13c7   : > { %v2730_v47 = vpop.xlane.xlu0 %2729 }
0x13c8   : > { %4290 = vrcp.f32 %v2730_v47 }
0x13d5   : > { %v4291_v15 = vpop.eup %4290 }
0x13d6   : > { %v2733_v17 = vmul.f32 %v4291_v15, %v2727_v10 }
0x13d8   : > { %4132 = vmatmul.mubr.msk.f32.vlgmr.msra.gmra.mxu1 %vm871_vm3, %v2733_v17 }
0x13d9   : > { %4135 = vmatpush3.msra.mxu1 %v2811_v23  ;;  %4142 = vmatprep.mubr.msk.f32.mxu1 %vm4324_vm1, %v5297_v30 }
0x13da   : > { %4136 = vmatprep.subr.mxu1 %v5297_v30 }
0x13db   : > { %4137 = vmatpush3.msra.mxu1 %v2810_v25 }
0x13dc   : > { %4138 = vmatprep.subr.mxu1 %v5297_v30 }
0x13dd   : > { %4139 = vmatpush3.msra.mxu1 %v2809_v51 }
0x13de   : > { %4140 = vmatprep.subr.mxu1 %v5297_v30 }
0x13df   : > { %4141 = vmatpush3.msra.mxu1 %v2808_v5 }
0x13e0   : > { %4156 = vmatprep.subr.mxu1 %v5297_v30 }
0x1498   : > { %v2803_v14 = vpop.f32.mrf.mxu1 }
0x1499   : > { %4143 = vmatmul.mubr.msk.f32.vlgmr.msra.gmra.mxu1 %vm461_vm0, %v2803_v14 }
0x149a   : > { %4157 = vmatpush3.msra.mxu1 %v3646_v52  ;;  %v4133_v40 = vpop.f32.mrf.mxu1  ;;  %4164 = vmatprep.mubr.msk.f32.mxu1 %vm4324_vm1, %v5297_v30 }
0x149b   : > { %4158 = vmatprep.subr.mxu1 %v5297_v30 }
0x149c   : > { %4159 = vmatpush3.msra.mxu1 %v3645_v28 }
0x149d   : > { %4160 = vmatprep.subr.mxu1 %v5297_v30 }
0x149e   : > { %4161 = vmatpush3.msra.mxu1 %v3644_v39 }
0x149f   : > { %4162 = vmatprep.subr.mxu1 %v5297_v30 }
0x14a0   : > { %4163 = vmatpush3.msra.mxu1 %v4312_v11 }
0x14a1   : > { %4165 = vmatmul.mubr.msk.f32.vlgmr.msra.gmra.mxu1 %vm461_vm0, %v2803_v14  ;;  %4178 = vmatprep.subr.mxu1 %v5297_v30 }
0x14a2   : > { %4179 = vmatpush3.msra.mxu1 %v4313_v55  ;;  %4186 = vmatprep.mubr.msk.f32.mxu1 %vm4324_vm1, %v5297_v30 }
0x14a3   : > { %4180 = vmatprep.subr.mxu1 %v5297_v30 }
0x14a4   : > { %4181 = vmatpush3.msra.mxu1 %v4314_v56 }
0x14a5   : > { %4182 = vmatprep.subr.mxu1 %v5297_v30 }
0x14a6   : > { %4183 = vmatpush3.msra.mxu1 %v4726_v18 }
0x14a7   : > { %4184 = vmatprep.subr.mxu1 %v5297_v30 }
0x14a8   : > { %4185 = vmatpush3.msra.mxu1 %v4733_v19 }
0x14a9   : > { %4187 = vmatmul.mubr.msk.f32.vlgmr.msra.gmra.mxu1 %vm461_vm0, %v2803_v14  ;;  %4200 = vmatprep.subr.mxu1 %v5297_v30 }
0x14aa   : > { %4201 = vmatpush3.msra.mxu1 %v4788_v9  ;;  %4208 = vmatprep.mubr.msk.f32.mxu1 %vm4324_vm1, %v5297_v30 }
0x14ab   : > { %4202 = vmatprep.subr.mxu1 %v5297_v30 }
0x14ac   : > { %4203 = vmatpush3.msra.mxu1 %v4794_v0 }
0x14ad   : > { %4204 = vmatprep.subr.mxu1 %v5297_v30 }
0x14ae   : > { %4205 = vmatpush3.msra.mxu1 %v4800_v20 }
0x14af   : > { %4206 = vmatprep.subr.mxu1 %v5297_v30 }
0x14b0   : > { %4207 = vmatpush3.msra.mxu1 %v4807_v26 }
0x1559   : > { %v2881_v18 = vpop.f32.mrf.mxu1 }
0x155a   : > { %v2882_v19 = vadd.f32 %v4745_v31, %v2881_v18 }
0x155b   : > { %v4144_v57 = vpop.f32.mrf.mxu1 }
0x155c   : > { %v2962_v9 = vadd.f32 %v5162_v2, %v2882_v19 }
0x155e   : > { %v2963_v58 = vadd.f32 %v4751_v34, %v2962_v9  ;;  %v3271_v34 = vadd.f32 %v4769_v21, %v5166_v42 }
0x1560   : > { %v3642_v59 = vmul.f32 -1.442695, %v2963_v58 }
0x1561   : > { %v3040_v60 = vpop.f32.mrf.mxu1 }
0x1562   : > { %4292 = vpow2.f32 %v3642_v59  ;;  %v3041_v0 = vadd.f32 %v4757_v38, %v3040_v60 }
0x1563   : > { %v4166_v61 = vpop.f32.mrf.mxu1 }
0x1564   : > { %v3118_v20 = vadd.f32 %v5164_v36, %v3041_v0 }
0x1566   : > { %v3119_v30 = vadd.f32 %v4763_v43, %v3118_v20 }
0x1568   : > { %v3653_v62 = vmul.f32 -1.442695, %v3119_v30 }
0x1569   : > { %v3196_v26 = vpop.f32.mrf.mxu1 }
0x156a   : > { %4294 = vpow2.f32 %v3653_v62  ;;  %v3197_v38 = vadd.f32 %v4775_v22, %v3196_v26 }
0x156b   : > { %v4188_v63 = vpop.f32.mrf.mxu1 }
0x156f   : > { %v4293_v31 = vpop.eup %4292 }
0x1570   : > { %v2967_v1 = vadd.f32 1.0, %v4293_v31 }
0x1572   : > { %4296 = vrcp.f32 %v2967_v1 }
0x1577   : > { %v4295_v2 = vpop.eup %4294 }
0x1578   : > { %v3123_v3 = vadd.f32 1.0, %v4295_v2 }
0x157a   : > { %4298 = vrcp.f32 %v3123_v3 }
0x157f   : > { %v4297_v29 = vpop.eup %4296 }
0x1580   : > { %v3274_v32 = vmul.f32 %v4297_v29, %v3271_v34 }
0x1582   : > { %v3275_v33 = vadd.f32 %v3274_v32, %v3197_v38 }
0x1584   : > { %4300 = vtanh.f32 %v3275_v33 }
0x1587   : > { %v4299_v43 = vpop.eup %4298 }
0x1588   : > { %v3277_v35 = vsub.f32 1.0, %v4299_v43  ;;  %v3279_v8 = vmul.f32 %v4299_v43, %v5082_v13 }
0x1591   : > { %v4301_v36 = vpop.eup %4300 }
0x1592   : > { %v3278_v44 = vmul.f32 %v4301_v36, %v3277_v35 }
0x1594   : > { %v3280_v46 = vadd.f32 %v3279_v8, %v3278_v44 }
0x1596   : > { %v3281_v45 = vsel %vm461_vm0, %v3280_v46, 0.0 }
0x1597   : > { %3282 = vadd.xlane.f32.xlu1 %v3281_v45 }
0x1620   : > { %v3283_v53 = vpop.xlane.xlu1 %3282 }
0x1621   : > { %v3284_v24 = vmul.f32 0.03125, %v3283_v53 }
0x1623   : > { %v3285_v21 = vsub.f32 %v3280_v46, %v3284_v24 }
0x1625   : > { %v3286_v42 = vmul.f32 %v3285_v21, %v3285_v21 }
0x1627   : > { %v3287_v37 = vsel %vm461_vm0, %v3286_v42, 0.0 }
0x1628   : > { %3288 = vadd.xlane.f32.xlu0 %v3287_v37 }
0x16b1   : > { %v3289_v22 = vpop.xlane.xlu0 %3288 }
0x16b2   : > { %v3290_v48 = vmul.f32 0.03125, %v3289_v22 }
0x16b4   : > { %v3291_v49 = vadd.f32 1e-05, %v3290_v48 }
0x16b6   : > { %4302 = vrsqrt.f32 %v3291_v49 }
0x16c3   : > { %v4303_v50 = vpop.eup %4302 }
0x16c4   : > { %v3293_v16 = vmul.f32 %v4303_v50, %v3285_v21 }
0x16c6   : > { %v3294_v13 = vmul.f32 %v4858_v27, %v3293_v16 }
0x16c8   : > { %v3295_v4 = vadd.f32 %v5298_v6, %v3294_v13 }
0x16ca   : > { %4209 = vmatmul.mubr.msk.f32.vlgmr.msra.gmra.mxu1 %vm461_vm0, %v3295_v4 }
0x178a   : > { %v3369_v7 = vpop.f32.mrf.mxu1 }
0x178b   : > { %v3370_v10 = vadd.f32 %v5299_v54, %v3369_v7 }
0x178c   : > { %v4210_v12 = vpop.f32.mrf.mxu1 }
0x178d   : > { %v3373_v47 = vmax.f32 %v3370_v10, 0.0 }
0x178f   : > { %4228 = vmatmul.mubr.msk.f32.vlgmr.msra.gmra.mxu0 %vm1588_vm4, %v3373_v47 }
0x184f   : > { %v3451_v15 = vpop.f32.mrf.mxu0 }
0x1850   : > { %v3455_v17 = vadd.f32 %v3451_v15, %v3280_v46 }
0x1851   : > { %v4229_v23 = vpop.f32.mrf.mxu0 }
0x1852   : > { %v3456_v27 = vadd.f32 %v4908_v41, %v3455_v17 }
0x1854   : > { %3457 = vst.msk [vmem:[%s437_s25] sm:$0xff] %vm461_vm0, %v3456_v27 }
0x1855 PF: > { %s23_s21 = sadd.s32 1, %s4321_s21  }
0x1856   : > { %p20_p5 = scmp.ge.s32.totalorder %s23_s21, 4  }
0x1858   :  { %22 = sbr.rel (!%p20_p5) target bundleno = 1 (0x1), region = 114 }

</bundles_post_ra>
